<compile_context>
chip_gen: v7x
topology: tpu7x:2x2x1
jax: 0.10.0
libtpu: 0.0.40
codegen_flags: <defaults>
</compile_context>

<pallas_src>
import jax
import jax.numpy as jnp
import numpy as np
from jax import lax
from jax.experimental import pallas as pl
from jax.experimental.pallas import tpu as pltpu


def _round_up(x, m):
    return ((x + m - 1) // m) * m


def _make_cnn_kernel(k_sz, kc, kc_pad, chunk, starts, flat_dot):
    """Build the fused conv1d(k) + global-max-pool + bias + ReLU kernel."""

    def kernel(x_ref, w_ref, b_ref, o_ref):
        # x_ref: (bt, C_in, L)        f32 raw NCL block (no wrapper preprocessing)
        # w_ref: (kc_pad, C_out_pad)  bf16 im2col-flattened weights (zero rows >= kc)
        # b_ref: (1, C_out_pad)       f32 bias
        # o_ref: (bt, C_out_pad)      pooled output (lane-dense)
        # In-kernel NCL -> NLC minor-dim transpose (XLU) then cast to bf16 (VPU).
        x_nlc = jnp.transpose(x_ref[...], (0, 2, 1)).astype(jnp.bfloat16)  # (bt, L, C_in)
        w = w_ref[...]
        b = b_ref[...]
        bt = x_nlc.shape[0]
        c_out_pad = w.shape[1]

        pooled = None
        for s in starts:  # static, clamped (possibly overlapping) position chunks
            # im2col for `chunk` output positions: K shifted windows concatenated
            # along the lane (channel) axis, zero-padded to a 128-multiple depth.
            # TODO(synk): on v5e the K accumulated shallow dots may beat the
            # lane-unaligned concat; measure both per-generation.
            cols = [x_nlc[:, s + kk: s + kk + chunk, :] for kk in range(k_sz)]
            if kc_pad > kc:
                cols.append(jnp.zeros((bt, chunk, kc_pad - kc), jnp.bfloat16))
            x_col = jnp.concatenate(cols, axis=-1)               # (bt, chunk, kc_pad)

            if flat_dot:
                # One large MXU matmul: M = bt*chunk, K = kc_pad, N = c_out_pad.
                y = jnp.dot(x_col.reshape(bt * chunk, kc_pad), w,
                            preferred_element_type=jnp.float32)
                y = y.reshape(bt, chunk, c_out_pad)
            else:
                # Tiny L_out: bt*chunk flatten is not bf16 sublane-tile aligned;
                # keep the 3-D contraction (small matmul, not the bottleneck).
                y = lax.dot_general(x_col, w, (((2,), (0,)), ((), ())),
                                    preferred_element_type=jnp.float32)

            cmax = jnp.max(y, axis=1)                            # (bt, c_out_pad)
            pooled = cmax if pooled is None else jnp.maximum(pooled, cmax)

        # Bias + ReLU after the pool: identical to relu(conv+b) then max, since
        # the bias is constant over length and ReLU is monotone.
        o_ref[...] = jnp.maximum(pooled + b, 0.0).astype(o_ref.dtype)

    return kernel


def cnn_forward(x_ncl, weight, bias, *, batch_tile=None, out_dtype=jnp.float32):
    """x_ncl: (N, C_in, L) f32; weight: (C_out, C_in, K) f32; bias: (C_out,) f32
    -> (N, C_out) `out_dtype`."""
    N, c_in, L = x_ncl.shape
    c_out, c_in_w, k_sz = weight.shape
    assert c_in_w == c_in
    l_out = L - k_sz + 1
    if l_out < 1:
        raise ValueError("input length must be >= kernel size")

    kc = k_sz * c_in
    kc_pad = _round_up(kc, 128)        # clean MXU contraction depth
    c_out_pad = _round_up(c_out, 128)  # lane-dense output

    # Output-position chunking: 16-wide (bf16 sublane tile) when possible.
    # Windows are clamped to [0, l_out - chunk] so they may overlap -- the max
    # is idempotent, so no -inf masking and no in-kernel length padding.
    chunk = 16 if l_out >= 16 else l_out
    n_chunks = -(-l_out // chunk)
    starts = [min(j * chunk, l_out - chunk) for j in range(n_chunks)]
    flat_dot = (chunk % 16 == 0)

    # Weights: (C_out, C_in, K) -> (K, C_in, C_out) -> (K*C_in, C_out), padded.
    # (Tiny; negligible wrapper work.)
    w2d = jnp.transpose(weight, (2, 1, 0)).reshape(kc, c_out)
    w2d = jnp.pad(w2d, ((0, kc_pad - kc), (0, c_out_pad - c_out))).astype(jnp.bfloat16)
    b2d = jnp.pad(bias.astype(jnp.float32).reshape(1, c_out),
                  ((0, 0), (0, c_out_pad - c_out)))

    # ---- chip-derived VMEM budget -------------------------------------------
    try:
        vmem_cap = int(pltpu.get_tpu_info().vmem_capacity_bytes)
    except Exception:
        vmem_cap = 64 << 20            # conservative fallback (v7x per-TC)
    budget = int(0.70 * vmem_cap)
    out_isize = np.dtype(out_dtype).itemsize

    def vmem_bytes(bt):
        # Double-buffered block tiles + in-kernel temporaries, including the
        # (sublane, lane) layout padding of the minor two dims.
        x_tile = bt * _round_up(c_in, 8) * _round_up(L, 128) * 4
        out_tile = bt * c_out_pad * out_isize
        w_tile = kc_pad * c_out_pad * 2
        b_tile = 8 * c_out_pad * 4
        x_nlc_f32 = bt * _round_up(L, 8) * _round_up(c_in, 128) * 4
        x_nlc_bf16 = bt * _round_up(L, 16) * _round_up(c_in, 128) * 2
        x_col = bt * _round_up(chunk, 16) * kc_pad * 2
        y_f32 = bt * _round_up(chunk, 8) * c_out_pad * 4
        pooled = bt * c_out_pad * 4
        return (2 * (x_tile + out_tile + w_tile + b_tile)
                + x_nlc_f32 + x_nlc_bf16 + x_col + y_f32 + pooled)

    # ---- batch-tile selection ------------------------------------------------
    n8 = _round_up(max(N, 1), 8)
    if batch_tile is None:
        bt = min(n8, 1024 if vmem_cap >= (96 << 20) else 512)
    else:
        bt = min(_round_up(batch_tile, 8), n8)
    while bt > 8 and vmem_bytes(bt) > budget:
        bt = max(8, _round_up(bt // 2, 8))

    steps = -(-N // bt)
    # Prefer an even step count so the "parallel" axis splits evenly over the
    # 2 TensorCores on v7x (harmless on 1-TC chips).
    if steps > 1 and steps % 2 == 1:
        bt_even = max(8, _round_up(-(-N // (steps + 1)), 8))
        if (-(-N // bt_even)) % 2 == 0 and vmem_bytes(bt_even) <= budget:
            bt = bt_even
            steps = -(-N // bt)

    vmem_limit = int(min(max(int(1.25 * vmem_bytes(bt)), 16 << 20),
                         int(0.9 * vmem_cap)))

    kernel = _make_cnn_kernel(k_sz, kc, kc_pad, chunk, starts, flat_dot)

    out = pl.pallas_call(
        kernel,
        out_shape=jax.ShapeDtypeStruct((N, c_out_pad), out_dtype),
        grid_spec=pltpu.PrefetchScalarGridSpec(
            num_scalar_prefetch=0,
            grid=(steps,),
            in_specs=[
                # Raw NCL block: full (C_in, L) minor dims, ragged batch handled
                # by Pallas boundary-block read/write masking (no jnp.pad).
                pl.BlockSpec((bt, c_in, L), lambda i: (i, 0, 0)),
                # Grid-invariant weight/bias blocks (constant index -> no re-DMA).
                pl.BlockSpec((kc_pad, c_out_pad), lambda i: (0, 0)),
                pl.BlockSpec((1, c_out_pad), lambda i: (0, 0)),
            ],
            out_specs=pl.BlockSpec((bt, c_out_pad), lambda i: (i, 0)),
        ),
        compiler_params=pltpu.CompilerParams(
            dimension_semantics=("parallel",),
            vmem_limit_bytes=vmem_limit,
        ),
    )(x_ncl, w2d, b2d)

    return out if c_out_pad == c_out else out[:, :c_out]


if __name__ == "__main__":
    # Shapes consistent with the char-CNN module:
    #   N = src_len * batch_size, C_in = e_char, L = m_word, C_out = e_word
    # N is deliberately not a multiple of 8 to exercise the ragged-batch path.
    N, C_IN, L, C_OUT, K = 13, 4, 16, 8, 5

    key = jax.random.PRNGKey(0)
    kx, kw, kb = jax.random.split(key, 3)
    x = jax.random.normal(kx, (N, C_IN, L), dtype=jnp.float32)

    # PyTorch-like Conv1d init: U(-bound, bound), bound = 1/sqrt(C_in * K)
    bound = 1.0 / float(np.sqrt(C_IN * K))
    weight = jax.random.uniform(kw, (C_OUT, C_IN, K),
                                minval=-bound, maxval=bound, dtype=jnp.float32)
    bias = jax.random.uniform(kb, (C_OUT,),
                              minval=-bound, maxval=bound, dtype=jnp.float32)

    out = jax.block_until_ready(cnn_forward(x, weight, bias))
    assert out.shape == (N, C_OUT)

    def reference(xf, wf):
        conv = lax.conv_general_dilated(
            xf, wf, window_strides=(1,), padding="VALID",
            dimension_numbers=("NCH", "OIH", "NCH"),
            precision=lax.Precision.HIGHEST,
            preferred_element_type=jnp.float32) + bias[None, :, None]
        return jnp.max(jnp.maximum(conv, 0.0), axis=2)

    # Tight check: same bf16-rounded operands, exact f32 accumulation.
    ref_bf16 = reference(x.astype(jnp.bfloat16).astype(jnp.float32),
                         weight.astype(jnp.bfloat16).astype(jnp.float32))
    err_b = float(jnp.max(jnp.abs(out - ref_bf16)))
    assert jnp.allclose(out, ref_bf16, atol=1e-4, rtol=1e-4), err_b

    # Loose check vs. the true f32 PyTorch-equivalent forward (bounds the
    # bf16-operand design choice).
    ref_f32 = reference(x, weight)
    err_f = float(jnp.max(jnp.abs(out - ref_f32)))
    assert jnp.allclose(out, ref_f32, atol=3e-2, rtol=3e-2), err_f

    print("KERNEL_OK")
</pallas_src>

<mosaic_0001>
module attributes {stable_mosaic.version = 11 : i64} {
  func.func @kernel(%arg0: i32, %arg1: memref<16x4x16xf32, #tpu.memory_space<vmem>>, %arg2: memref<128x128xbf16, #tpu.memory_space<vmem>>, %arg3: memref<1x128xf32, #tpu.memory_space<vmem>>, %arg4: memref<16x128xf32, #tpu.memory_space<vmem>>) attributes {dimension_semantics = [#tpu.dimension_semantics<parallel>], iteration_bounds = array<i64: 1>, scalar_prefetch = 0 : i64, scratch_operands = 0 : i64, tpu.core_type = #tpu.core_type<tc>, window_params = [{transform_indices = @transform_0, window_bounds = array<i64: 16, 4, 16>}, {pipeline_mode = #tpu.pipeline_mode<synchronous>, transform_indices = @transform_1, window_bounds = array<i64: 128, 128>}, {pipeline_mode = #tpu.pipeline_mode<synchronous>, transform_indices = @transform_2, window_bounds = array<i64: 1, 128>}, {transform_indices = @transform_3, window_bounds = array<i64: 16, 128>}]} {
    %c0 = arith.constant 0 : index
    %c0_0 = arith.constant 0 : index
    %c0_1 = arith.constant 0 : index
    %0 = vector.load %arg1[%c0, %c0_0, %c0_1] : memref<16x4x16xf32, #tpu.memory_space<vmem>>, vector<16x4x16xf32>
    %1 = tpu.transpose %0, [0, 2, 1] : vector<16x4x16xf32> -> vector<16x16x4xf32>
    %2 = arith.truncf %1 : vector<16x16x4xf32> to vector<16x16x4xbf16>
    %c0_2 = arith.constant 0 : index
    %c0_3 = arith.constant 0 : index
    %3 = vector.load %arg2[%c0_2, %c0_3] : memref<128x128xbf16, #tpu.memory_space<vmem>>, vector<128x128xbf16>
    %c0_4 = arith.constant 0 : index
    %c0_5 = arith.constant 0 : index
    %4 = vector.load %arg3[%c0_4, %c0_5] : memref<1x128xf32, #tpu.memory_space<vmem>>, vector<1x128xf32>
    %5 = vector.extract_strided_slice %2 {offsets = [0, 0, 0], sizes = [16, 12, 4], strides = [1, 1, 1]} : vector<16x16x4xbf16> to vector<16x12x4xbf16>
    %6 = vector.extract_strided_slice %2 {offsets = [0, 1, 0], sizes = [16, 12, 4], strides = [1, 1, 1]} : vector<16x16x4xbf16> to vector<16x12x4xbf16>
    %7 = vector.extract_strided_slice %2 {offsets = [0, 2, 0], sizes = [16, 12, 4], strides = [1, 1, 1]} : vector<16x16x4xbf16> to vector<16x12x4xbf16>
    %8 = vector.extract_strided_slice %2 {offsets = [0, 3, 0], sizes = [16, 12, 4], strides = [1, 1, 1]} : vector<16x16x4xbf16> to vector<16x12x4xbf16>
    %9 = vector.extract_strided_slice %2 {offsets = [0, 4, 0], sizes = [16, 12, 4], strides = [1, 1, 1]} : vector<16x16x4xbf16> to vector<16x12x4xbf16>
    %cst = arith.constant 0.000000e+00 : bf16
    %10 = vector.broadcast %cst : bf16 to vector<16x12x108xbf16>
    %11 = tpu.concatenate %5, %6, %7, %8, %9, %10 in 2 : vector<16x12x4xbf16>, vector<16x12x4xbf16>, vector<16x12x4xbf16>, vector<16x12x4xbf16>, vector<16x12x4xbf16>, vector<16x12x108xbf16> -> vector<16x12x128xbf16>
    %cst_6 = arith.constant dense<0.000000e+00> : vector<16x12x128xf32>
    %12 = tpu.matmul %11, %3, %cst_6 {dimension_numbers = #tpu.dot_dimension_numbers<[2], [0], [0, 1], [1], [0, 0, 0, 1, 1, 1], [], []>} : vector<16x12x128xbf16>, vector<128x128xbf16>, vector<16x12x128xf32> -> vector<16x12x128xf32>
    %cst_7 = arith.constant dense<0xFF800000> : vector<16x128xf32>
    %13 = vector.multi_reduction <maximumf>, %12, %cst_7 [1] : vector<16x12x128xf32> to vector<16x128xf32>
    %14 = vector.broadcast %4 : vector<1x128xf32> to vector<16x128xf32>
    %15 = arith.addf %13, %14 : vector<16x128xf32>
    %cst_8 = arith.constant 0.000000e+00 : f32
    %16 = vector.broadcast %cst_8 : f32 to vector<16x128xf32>
    %17 = arith.maximumf %15, %16 : vector<16x128xf32>
    %c0_9 = arith.constant 0 : index
    %c0_10 = arith.constant 0 : index
    %18 = vector.load %arg4[%c0_9, %c0_10] : memref<16x128xf32, #tpu.memory_space<vmem>>, vector<16x128xf32>
    tpu.vector_store %arg4[%c0_9, %c0_10], %17 {strides = array<i32>} : memref<16x128xf32, #tpu.memory_space<vmem>>, vector<16x128xf32>,
    return
  }
  func.func @transform_0(%arg0: i32) -> (i32, i32, i32) {
    %c0_i32 = arith.constant 0 : i32
    %c0_i32_0 = arith.constant 0 : i32
    %c0_i32_1 = arith.constant 0 : i32
    return %arg0, %c0_i32, %c0_i32_0 : i32, i32, i32
  }
  func.func @transform_1(%arg0: i32) -> (i32, i32) {
    %c0_i32 = arith.constant 0 : i32
    %c0_i32_0 = arith.constant 0 : i32
    %c0_i32_1 = arith.constant 0 : i32
    return %c0_i32, %c0_i32_0 : i32, i32
  }
  func.func @transform_2(%arg0: i32) -> (i32, i32) {
    %c0_i32 = arith.constant 0 : i32
    %c0_i32_0 = arith.constant 0 : i32
    %c0_i32_1 = arith.constant 0 : i32
    return %c0_i32, %c0_i32_0 : i32, i32
  }
  func.func @transform_3(%arg0: i32) -> (i32, i32) {
    %c0_i32 = arith.constant 0 : i32
    %c0_i32_0 = arith.constant 0 : i32
    return %arg0, %c0_i32 : i32, i32
  }
}

</mosaic_0001>

<bundles_post_ra>
// kernel: tpu_custom_call.1
= control target key start
LH: loop header
LB: loop body
LE: loop exit
PB: predicated region body
PF: predicated region fallthrough
CT: control target
= control target key end

     0   :  { %8 = vsyncpa [#allocation3], 0  ;;  %s2890_s0 = inlined_call_operand.hbm [shape: f32[13,4,16], index: 0, kind: input, shape index: {}]   ;;  %s2891_s1 = inlined_call_operand.hbm [shape: bf16[128,128], index: 1, kind: input, shape index: {}]   ;;  %s2892_s2 = inlined_call_operand.vmem [shape: f32[1,128], index: 2, kind: input, shape index: {}]   ;;  %s2893_s3 = inlined_call_operand.hbm [shape: f32[13,128], index: 3, kind: output, shape index: {}]  }
   0x1   :  { %9 = vsyncpa [#allocation6], 0 }
   0x2   :  { %10 = vsyncpa [#allocation4], 0 }
   0x3   :  { %15 = vsyncadd [#allocation3], 192  ;;  %s2356_s12 = smov [#allocation2]   ;;  %s2284_s16 = scalar_lea.hbm %s2890_s0, 832 }
   0x4   :  { %s16_s13 = sshll.u32 %s2356_s12, 4  ;;  %p2285_p0 = scmp.ne.s32.totalorder %s2890_s0, %s2284_s16  ;;  %s17_s13 = int_to_ptr.vmem [resolvable:$true] %s16_s13 }
   0x5   :  { %p2288_p1 = scmp.lt.u32.totalorder %s2284_s16, %s2890_s0 }
   0x7   :  { %p2290_p2 = pnand %p2288_p1, %p2285_p0 }
   0x9   :  { %2293 = shalt.err (!%p2290_p2)
}
   0xa   :  { %s2294_s21 = scalar_lea.vmem %s17_s13, 832  ;;  %s2298_s22 = scalar_lea.vmem %s17_s13, 1024 }
   0xb   :  { %p2295_p3 = scmp.ne.s32.totalorder %s17_s13, %s2294_s21  ;;  %p2299_p4 = scmp.lt.s32.totalorder %s17_s13, %s17_s13 }
   0xc   :  { %p2300_p5 = scmp.lt.s32.totalorder %s2298_s22, %s2294_s21 }
   0xe   :  { %p2301_p6 = por %p2300_p5, %p2299_p4 }
  0x10   :  { %p2302_p7 = pnand %p2301_p6, %p2295_p3 }
  0x12   :  { %2305 = shalt.err (!%p2302_p7)
}
  0x13   :  { %s2357_s23 = smov 64   ;;  %s2358_s24 = smov 4  }
  0x14   :  { %22 = dma.hbm_to_vmem [thread:$0]  %s2890_s0, 832, %s17_s13, [#allocation3], %s2357_s23, %s2357_s23, %s2358_s24  }
  0x15   :  { %s2359_s27 = smov [#allocation5]   ;;  %s2306_s4 = scalar_lea.hbm %s2891_s1, 1024 }
  0x16   :  { %s28_s28 = sshll.u32 %s2359_s27, 4  ;;  %p2307_p8 = scmp.ne.s32.totalorder %s2891_s1, %s2306_s4  ;;  %s29_s28 = int_to_ptr.vmem [resolvable:$true] %s28_s28 }
  0x17   :  { %p2310_p9 = scmp.lt.u32.totalorder %s2306_s4, %s2891_s1 }
  0x19   :  { %p2312_p10 = pnand %p2310_p9, %p2307_p8 }
  0x1b   :  { %2315 = shalt.err (!%p2312_p10)
}
  0x1c   :  { %s2316_s9 = scalar_lea.vmem %s29_s28, 1024  ;;  %p2321_p12 = scmp.lt.s32.totalorder %s29_s28, %s29_s28 }
  0x1d   :  { %p2317_p11 = scmp.ne.s32.totalorder %s29_s28, %s2316_s9  ;;  %p2322_p13 = scmp.lt.s32.totalorder %s2316_s9, %s2316_s9 }
  0x1f   :  { %p2323_p0 = por %p2322_p13, %p2321_p12 }
  0x21   :  { %p2324_p1 = pnand %p2323_p0, %p2317_p11 }
  0x23   :  { %2327 = shalt.err (!%p2324_p1)
}
  0x24   :  { %34 = dma.hbm_to_vmem [thread:$0]  %s2891_s1, 1024, %s29_s28, [#allocation6], %s2357_s23, %s2357_s23, %s2358_s24  }
  0x25   :  { %2350 = dma.done.wait [#allocation3], 1024  }
  0x26   :  { %2351 = vsyncadd [#allocation3], 4294966272 }
  0x27   :  { %2352 = dma.done.wait [#allocation6], 1024  }
  0x28   :  { %2353 = vsyncadd [#allocation6], 4294966272  ;;  %v44_v0 = vld [vmem:[#allocation2] sm:$0xf]  ;;  %v53_v2 = vld [vmem:[#allocation2 + $0x24] sm:$0xf] }
  0x29   :  { %v52_v1 = vld [vmem:[#allocation2 + $0x20] sm:$0xf]  ;;  %v54_v4 = vld [vmem:[#allocation2 + $0x28] sm:$0xf]  ;;  %v45_v5 = vld [vmem:[#allocation2 + $0x4] sm:$0xf] }
  0x2a   :  { %v2180_v3 = vpack.i.bf16 %v52_v1, %v44_v0  ;;  %v46_v6 = vld [vmem:[#allocation2 + $0x8] sm:$0xf]  ;;  %v2204_v7 = vpack.i.bf16 %v54_v4, %v53_v2  ;;  %v47_v8 = vld [vmem:[#allocation2 + $0xc] sm:$0xf]  ;;  %v48_v11 = vld [vmem:[#allocation2 + $0x10] sm:$0xf] }
  0x2b   :  { %v55_v9 = vld [vmem:[#allocation2 + $0x2c] sm:$0xf]  ;;  %v2192_v10 = vpack.i.bf16 %v46_v6, %v45_v5  ;;  %v56_v13 = vld [vmem:[#allocation2 + $0x30] sm:$0xf]  ;;  %v49_v14 = vld [vmem:[#allocation2 + $0x14] sm:$0xf] }
  0x2c   :  { %2181 = vxpose.xlu0.b32.start.end [1/1] (short) (narrow) %v2180_v3, 16  ;;  %2205 = vxpose.xlu1.b32.start.end [1/1] (short) (narrow) %v2204_v7, 16  ;;  %v2216_v12 = vpack.i.bf16 %v55_v9, %v47_v8  ;;  %v57_v15 = vld [vmem:[#allocation2 + $0x34] sm:$0xf]  ;;  %v2228_v16 = vpack.i.bf16 %v56_v13, %v48_v11  ;;  %v50_v17 = vld [vmem:[#allocation2 + $0x18] sm:$0xf] }
  0x2d   :  { %v58_v18 = vld [vmem:[#allocation2 + $0x38] sm:$0xf]  ;;  %v2240_v19 = vpack.i.bf16 %v57_v15, %v49_v14  ;;  %v51_v20 = vld [vmem:[#allocation2 + $0x1c] sm:$0xf]  ;;  %s2360_s1 = smov 8   ;;  %s2361_s11 = smov 16  }
  0x2e   :  { %v59_v21 = vld [vmem:[#allocation2 + $0x3c] sm:$0xf]  ;;  %v2252_v22 = vpack.i.bf16 %v58_v18, %v50_v17  ;;  %v2277_v15 = vld [vmem:[#allocation5 + $0x8] sm:$0xff]   ;;  %s2362_s12 = smov 12   ;;  %vm941_vm0 = vcmask 31744   ;;  %vm974_vm1 = vcmask 64512  }
  0x2f   :  { %v2264_v23 = vpack.i.bf16 %v59_v21, %v51_v20  ;;  %vm1040_vm2 = vcmask 130048   ;;  %vm1007_vm3 = vcmask 97280   ;;  %vm1073_vm4 = vcmask 162816  }
  0x30   :  { %vm1844_vm5 = vcmask 1043456   ;;  %vm2028_vm6 = vcmask 1041409   ;;  %vm2031_vm7 = vcmask 1042434   ;;  %vm2034_vm8 = vcmask 1043459  }
  0x31   :  { %2193 = vxpose.xlu0.b32.start.end [1/1] (short) (narrow) %v2192_v10, 16  ;;  %2217 = vxpose.xlu1.b32.start.end [1/1] (short) (narrow) %v2216_v12, 16  ;;  %v2276_v10 = vld [vmem:[#allocation5] sm:$0xff]   ;;  %vm2037_vm9 = vcmask 1044484   ;;  %vm2040_vm10 = vcmask 1045509   ;;  %vm2043_vm11 = vcmask 1046534  }
  0x32   :  { %2113 = vmatprep.subr.bf16.mxu0 %v2276_v10  ;;  %2153 = vmatprep.subr.bf16.mxu1 %v2276_v10  ;;  %vm2046_vm12 = vcmask 1047559  }
  0x33   :  { %2114 = vmatpush3.bf16.msra.mxu0 %v2276_v10  ;;  %2161 = vmatpush3.bf16.msra.mxu1 %v2276_v10 }
  0x34   :  { %2115 = vmatprep.subr.bf16.mxu0 %v2277_v15  ;;  %2154 = vmatprep.subr.bf16.mxu1 %v2277_v15 }
  0x36   :  { %2229 = vxpose.xlu0.b32.start.end [1/1] (short) (narrow) %v2228_v16, 16  ;;  %2241 = vxpose.xlu1.b32.start.end [1/1] (short) (narrow) %v2240_v19, 16 }
  0x37   :  { %2116 = vmatpush3.bf16.msra.mxu0 %v2277_v15  ;;  %2162 = vmatpush3.bf16.msra.mxu1 %v2277_v15  ;;  %v2282_v15 = vld [vmem:[#allocation5 + $0x30] sm:$0xff]  }
  0x3b   :  { %2253 = vxpose.xlu0.b32.start.end [1/1] (short) (narrow) %v2252_v22, 16  ;;  %2265 = vxpose.xlu1.b32.start.end [1/1] (short) (narrow) %v2264_v23, 16 }
  0xac   :  { %v2182_v24 = vpop.trf.xlu0  ;;  %v2206_v25 = vpop.trf.xlu1 }
  0xad   :  { %v2186_v26 = vunpack.i.h.bf16 %v2182_v24  ;;  %v2183_v27 = vunpack.i.l.bf16 %v2182_v24  ;;  %v2210_v37 = vunpack.i.h.bf16 %v2206_v25  ;;  %v2207_v44 = vunpack.i.l.bf16 %v2206_v25 }
  0xb0   :  { %v2187_v28 = vpop.trf.xlu0  ;;  %v2211_v31 = vpop.trf.xlu1 }
  0xb1   :  { %v2191_v29 = vunpack.i.h.bf16 %v2187_v28  ;;  %v2188_v30 = vunpack.i.l.bf16 %v2187_v28  ;;  %v2215_v40 = vunpack.i.h.bf16 %v2211_v31  ;;  %v2212_v45 = vunpack.i.l.bf16 %v2211_v31 }
  0xb3   :  { %v2412_v32 = vpack.c.bf16 %v2188_v30, %v2183_v27  ;;  %v2414_v33 = vpack.c.bf16 %v2191_v29, %v2186_v26  ;;  %v2424_v48 = vpack.c.bf16 %v2215_v40, %v2210_v37  ;;  %v2431_v53 = vpack.c.bf16 %v2212_v45, %v2207_v44  ;;  %v2278_v30 = vld [vmem:[#allocation5 + $0x10] sm:$0xff]  }
  0xb4   :  { %v2194_v34 = vpop.trf.xlu0  ;;  %v2429_v52 = vpop.trf.xlu1  ;;  %2117 = vmatprep.subr.bf16.mxu0 %v2278_v30  ;;  %2155 = vmatprep.subr.bf16.mxu1 %v2278_v30 }
  0xb5   :  { %v773_v35 = vrot.slane %v2414_v33, 1  ;;  %v765_v36 = vrot.slane %v2412_v32, 1  ;;  %v2198_v38 = vunpack.i.h.bf16 %v2194_v34  ;;  %v2195_v39 = vunpack.i.l.bf16 %v2194_v34  ;;  %2118 = vmatpush3.bf16.msra.mxu0 %v2278_v30  ;;  %2163 = vmatpush3.bf16.msra.mxu1 %v2278_v30 }
  0xb6   :  { %v608_v51 = vshll.u32 %v2412_v32, 16  ;;  %v664_v54 = vshll.u32 %v2414_v33, 16  ;;  %v678_v55 = vshll.u32 %v2424_v48, 16  ;;  %v775_v57 = vrot.slane %v2424_v48, 1 }
  0xb7   :  { %797 = vrot.lane.b32.xlu0 %v773_v35, %s2360_s1  ;;  %781 = vrot.lane.b32.xlu1 %v765_v36, %s2360_s1  ;;  %v774_v58 = vrot.slane %v2431_v53, 1  ;;  %v893_v60 = vrot.slane %v2412_v32, 2  ;;  %v606_v61 = vshrl.u32 %v2412_v32, 16  ;;  %v662_v62 = vshrl.u32 %v2414_v33, 16 }
  0xb8   :  { %v2199_v41 = vpop.trf.xlu0  ;;  %v610_v59 = vrot.slane %v608_v51, 1  ;;  %v676_v63 = vshrl.u32 %v2424_v48, 16  ;;  %v2449_v0 = vpop.trf.xlu1  ;;  %v666_v1 = vrot.slane %v664_v54, 1  ;;  %v680_v2 = vrot.slane %v678_v55, 1 }
  0xb9   :  { %v2203_v42 = vunpack.i.h.bf16 %v2199_v41  ;;  %v2200_v43 = vunpack.i.l.bf16 %v2199_v41  ;;  %v837_v8 = vrot.slane %v662_v62, 1  ;;  %v838_v9 = vrot.slane %v664_v54, 2 }
  0xba   :  { %v611_v3 = vor.u32 %v610_v59, %v606_v61  ;;  %v667_v7 = vor.u32 %v666_v1, %v662_v62  ;;  %v681_v11 = vor.u32 %v680_v2, %v676_v63  ;;  %v671_v18 = vshll.u32 %v2431_v53, 16 }
  0xbb   :  { %v2420_v46 = vpack.c.bf16 %v2200_v43, %v2195_v39  ;;  %v2422_v47 = vpack.c.bf16 %v2203_v42, %v2198_v38  ;;  %v839_v17 = vor.u32 %v838_v9, %v837_v8  ;;  %v843_v24 = vrot.slane %v676_v63, 1 }
  0xbc   :  { %v2437_v56 = vpop.trf.xlu0  ;;  %v2456_v6 = vpop.trf.xlu1  ;;  %v669_v25 = vshrl.u32 %v2431_v53, 16  ;;  %v673_v28 = vrot.slane %v671_v18, 1  ;;  %v844_v29 = vrot.slane %v678_v55, 2  ;;  %v2222_v31 = vunpack.i.h.bf16 %v2429_v52 }
  0xbd   :  { %v767_v49 = vrot.slane %v2422_v47, 1  ;;  %v766_v50 = vrot.slane %v2420_v46, 1  ;;  %v615_v4 = vshll.u32 %v2420_v46, 16  ;;  %v620_v13 = vshrl.u32 %v2422_v47, 16 }
  0xbe   :  { %v622_v14 = vshll.u32 %v2422_v47, 16  ;;  %v613_v16 = vshrl.u32 %v2420_v46, 16  ;;  %v2227_v34 = vunpack.i.h.bf16 %v2449_v0  ;;  %v813_v37 = vrot.slane %v606_v61, 1  ;;  %v2280_v61 = vld [vmem:[#allocation5 + $0x20] sm:$0xff]  }
  0xbf   :  { %785 = vrot.lane.b32.xlu0 %v767_v49, %s2360_s1  ;;  %783 = vrot.lane.b32.xlu1 %v766_v50, %s2360_s1  ;;  %v617_v12 = vrot.slane %v615_v4, 1  ;;  %v819_v21 = vrot.slane %v620_v13, 1  ;;  %v674_v38 = vor.u32 %v673_v28, %v669_v25  ;;  %v845_v39 = vor.u32 %v844_v29, %v843_v24  ;;  %v2279_v49 = vld [vmem:[#allocation5 + $0x18] sm:$0xff]  }
  0xc0   :  { %v2452_v5 = vpop.trf.xlu0  ;;  %v624_v20 = vrot.slane %v622_v14, 1  ;;  %v820_v22 = vrot.slane %v622_v14, 2  ;;  %v2466_v23 = vpop.trf.xlu1  ;;  %v814_v40 = vrot.slane %v608_v51, 2  ;;  %v2234_v41 = vunpack.i.h.bf16 %v2437_v56  ;;  %2119 = vmatprep.subr.bf16.mxu0 %v2279_v49  ;;  %2156 = vmatprep.subr.bf16.mxu1 %v2279_v49 }
  0xc1   :  { %v618_v19 = vor.u32 %v617_v12, %v613_v16  ;;  %v2484_v42 = vpack.c.bf16 %v2227_v34, %v2222_v31  ;;  %v2239_v43 = vunpack.i.h.bf16 %v2452_v5  ;;  %v816_v44 = vrot.slane %v613_v16, 1  ;;  %2120 = vmatpush3.bf16.msra.mxu0 %v2279_v49  ;;  %2164 = vmatpush3.bf16.msra.mxu1 %v2279_v49 }
  0xc2   :  { %v625_v26 = vor.u32 %v624_v20, %v620_v13  ;;  %v821_v27 = vor.u32 %v820_v22, %v819_v21  ;;  %v901_v45 = vrot.slane %v2414_v33, 2  ;;  %v815_v50 = vor.u32 %v814_v40, %v813_v37  ;;  %2121 = vmatprep.subr.bf16.mxu0 %v2280_v61  ;;  %2157 = vmatprep.subr.bf16.mxu1 %v2280_v61 }
  0xc3   :  { %801 = vrot.lane.b32.xlu0 %v775_v57, %s2360_s1  ;;  %799 = vrot.lane.b32.xlu1 %v774_v58, %s2360_s1  ;;  %v817_v51 = vrot.slane %v615_v4, 2  ;;  %v2496_v57 = vpack.c.bf16 %v2239_v43, %v2234_v41  ;;  %v685_v58 = vshll.u32 %v2484_v42, 16  ;;  %v2219_v59 = vunpack.i.l.bf16 %v2429_v52 }
  0xc4   :  { %v2475_v35 = vpop.trf.xlu0  ;;  %v2477_v36 = vpop.trf.xlu1  ;;  %v840_v62 = vrot.slane %v669_v25, 1  ;;  %v895_v1 = vrot.slane %v2422_v47, 2  ;;  %v841_v2 = vrot.slane %v671_v18, 2  ;;  %v2231_v8 = vunpack.i.l.bf16 %v2437_v56 }
  0xc5   :  { %v818_v63 = vor.u32 %v817_v51, %v816_v44  ;;  %v687_v52 = vrot.slane %v685_v58, 1  ;;  %2122 = vmatpush3.bf16.msra.mxu0 %v2280_v61  ;;  %2165 = vmatpush3.bf16.msra.mxu1 %v2280_v61  ;;  %v2236_v9 = vunpack.i.l.bf16 %v2452_v5  ;;  %v690_v13 = vshrl.u32 %v2496_v57, 16 }
  0xc6   :  { %v842_v10 = vor.u32 %v841_v2, %v840_v62  ;;  %v894_v5 = vrot.slane %v2420_v46, 2  ;;  %v2251_v20 = vunpack.i.h.bf16 %v2466_v23  ;;  %v902_v21 = vrot.slane %v2431_v53, 2 }
  0xc7   :  { %909 = vrot.lane.b32.xlu1 %v893_v60, %s2361_s11  ;;  %717 = vrot.lane.b32.xlu0 %v611_v3, %s2358_s24  ;;  %v2224_v60 = vunpack.i.l.bf16 %v2449_v0  ;;  %v683_v3 = vshrl.u32 %v2484_v42, 16  ;;  %v692_v0 = vshll.u32 %v2496_v57, 16  ;;  %v2518_v56 = vpack.c.bf16 %v2236_v9, %v2231_v8 }
  0xc8   :  { %v2490_v54 = vpop.trf.xlu0  ;;  %v2492_v55 = vpop.trf.xlu1  ;;  %v776_v28 = vrot.slane %v2484_v42, 1  ;;  %v2243_v37 = vunpack.i.l.bf16 %v2456_v6  ;;  %v777_v40 = vrot.slane %v2496_v57, 1  ;;  %v847_v41 = vrot.slane %v685_v58, 2 }
  0xc9   :  { %v2508_v4 = vpack.c.bf16 %v2224_v60, %v2219_v59  ;;  %v688_v12 = vor.u32 %v687_v52, %v683_v3  ;;  %v694_v14 = vrot.slane %v692_v0, 1  ;;  %v636_v25 = vshll.u32 %v2518_v56, 16 }
  0xca   :  { %v634_v29 = vshrl.u32 %v2518_v56, 16  ;;  %v846_v34 = vrot.slane %v683_v3, 1  ;;  %v769_v58 = vrot.slane %v2518_v56, 1  ;;  %v850_v60 = vrot.slane %v692_v0, 2 }
  0xcb   :  { %733 = vrot.lane.b32.xlu1 %v667_v7, %s2358_s24  ;;  %737 = vrot.lane.b32.xlu0 %v681_v11, %s2358_s24  ;;  %v2281_v7 = vld [vmem:[#allocation5 + $0x28] sm:$0xff]   ;;  %v903_v11 = vrot.slane %v2424_v48, 2  ;;  %v629_v16 = vshll.u32 %v2508_v4, 16  ;;  %v695_v18 = vor.u32 %v694_v14, %v690_v13  ;;  %v627_v22 = vshrl.u32 %v2508_v4, 16 }
  0xcc   :  { %2123 = vmatprep.subr.bf16.mxu0 %v2281_v7  ;;  %2158 = vmatprep.subr.bf16.mxu1 %v2281_v7  ;;  %v638_v30 = vrot.slane %v636_v25, 1  ;;  %v768_v49 = vrot.slane %v2508_v4, 1  ;;  %v825_v3 = vrot.slane %v634_v29, 1  ;;  %v826_v0 = vrot.slane %v636_v25, 2 }
  0xcd   :  { %2124 = vmatpush3.bf16.msra.mxu0 %v2281_v7  ;;  %2166 = vmatpush3.bf16.msra.mxu1 %v2281_v7  ;;  %v631_v24 = vrot.slane %v629_v16, 1  ;;  %v822_v51 = vrot.slane %v627_v22, 1  ;;  %v823_v59 = vrot.slane %v629_v16, 2  ;;  %v904_v7 = vrot.slane %v2484_v42, 2 }
  0xce   :  { %2125 = vmatprep.subr.bf16.mxu0 %v2282_v15  ;;  %2159 = vmatprep.subr.bf16.mxu1 %v2282_v15  ;;  %v2258_v8 = vunpack.i.h.bf16 %v2475_v35  ;;  %v2263_v9 = vunpack.i.h.bf16 %v2490_v54  ;;  %v2275_v14 = vunpack.i.h.bf16 %v2492_v55  ;;  %v905_v16 = vrot.slane %v2496_v57, 2 }
  0xcf   :  { %719 = vrot.lane.b32.xlu1 %v618_v19, %s2358_s24  ;;  %877 = vrot.lane.b32.xlu0 %v839_v17, %s2362_s12  ;;  %v2283_v17 = vld [vmem:[#allocation5 + $0x38] sm:$0xff]   ;;  %v2246_v19 = vunpack.i.h.bf16 %v2456_v6  ;;  %v848_v6 = vor.u32 %v847_v41, %v846_v34  ;;  %v824_v62 = vor.u32 %v823_v59, %v822_v51 }
  0xd1   :  { %2126 = vmatpush3.bf16.msra.mxu0 %v2282_v15  ;;  %2167 = vmatpush3.bf16.msra.mxu1 %v2282_v15 }
  0xd2   :  { %2127 = vmatprep.subr.bf16.mxu0 %v2283_v17  ;;  %2160 = vmatprep.subr.bf16.mxu1 %v2283_v17 }
  0xd3   :  { %721 = vrot.lane.b32.xlu1 %v625_v26, %s2358_s24  ;;  %865 = vrot.lane.b32.xlu0 %v821_v27, %s2362_s12  ;;  %v2531_v26 = vpack.c.bf16 %v2251_v20, %v2246_v19  ;;  %v632_v27 = vor.u32 %v631_v24, %v627_v22  ;;  %v2255_v20 = vunpack.i.l.bf16 %v2475_v35  ;;  %v2272_v35 = vunpack.i.l.bf16 %v2492_v55 }
  0xd5   :  { %2128 = vmatpush3.bf16.msra.mxu0 %v2283_v17  ;;  %2168 = vmatpush3.bf16.msra.mxu1 %v2283_v17  ;;  %v699_v31 = vshll.u32 %v2531_v26, 16  ;;  %v697_v43 = vshrl.u32 %v2531_v26, 16  ;;  %v906_v34 = vrot.slane %v2531_v26, 2 }
  0xd7   :  { %735 = vrot.lane.b32.xlu1 %v674_v38, %s2358_s24  ;;  %881 = vrot.lane.b32.xlu0 %v845_v39, %s2362_s12  ;;  %v2248_v38 = vunpack.i.l.bf16 %v2466_v23  ;;  %v639_v39 = vor.u32 %v638_v30, %v634_v29  ;;  %v701_v44 = vrot.slane %v699_v31, 1  ;;  %v852_v15 = vrot.slane %v697_v43, 1 }
  0xd8   :  { %v853_v17 = vrot.slane %v699_v31, 2  ;;  %v2267_v30 = vunpack.i.l.bf16 %v2477_v36 }
  0xd9   :  { %v702_v23 = vor.u32 %v701_v44, %v697_v43 }
  0xda   :  { %v854_v24 = vor.u32 %v853_v17, %v852_v15  ;;  %v2595_v41 = vpack.c.bf16 %v2272_v35, %v2267_v30 }
  0xdb   :  { %861 = vrot.lane.b32.xlu1 %v815_v50, %s2362_s12  ;;  %925 = vrot.lane.b32.xlu0 %v901_v45, %s2361_s11  ;;  %v2546_v45 = vpack.c.bf16 %v2248_v38, %v2243_v37  ;;  %v849_v50 = vrot.slane %v690_v13, 1  ;;  %v2569_v13 = vpack.c.bf16 %v2263_v9, %v2258_v8 }
  0xdd   :  { %v643_v61 = vshll.u32 %v2546_v45, 16  ;;  %v706_v19 = vshll.u32 %v2569_v13, 16  ;;  %v770_v22 = vrot.slane %v2546_v45, 1  ;;  %v704_v25 = vshrl.u32 %v2569_v13, 16 }
  0xde   :  { %v898_v44 = vrot.slane %v2546_v45, 2  ;;  %v779_v51 = vrot.slane %v2569_v13, 1  ;;  %v907_v15 = vrot.slane %v2569_v13, 2 }
  0xdf   :  { %863 = vrot.lane.b32.xlu1 %v818_v63, %s2362_s12  ;;  %913 = vrot.lane.b32.xlu0 %v895_v1, %s2361_s11  ;;  %v851_v63 = vor.u32 %v850_v60, %v849_v50  ;;  %v641_v1 = vshrl.u32 %v2546_v45, 16  ;;  %v645_v2 = vrot.slane %v643_v61, 1  ;;  %v829_v37 = vrot.slane %v643_v61, 2 }
  0xe0   :  { %v855_v60 = vrot.slane %v704_v25, 1 }
  0xe1   :  { %v646_v52 = vor.u32 %v645_v2, %v641_v1  ;;  %v828_v29 = vrot.slane %v641_v1, 1 }
  0xe3   :  { %879 = vrot.lane.b32.xlu1 %v842_v10, %s2362_s12  ;;  %929 = vrot.lane.b32.xlu0 %v903_v11, %s2361_s11  ;;  %v827_v10 = vor.u32 %v826_v0, %v825_v3  ;;  %v778_v11 = vrot.slane %v2531_v26, 1  ;;  %v772_v0 = vrot.slane %v2595_v41, 1 }
  0xe7   :  { %911 = vrot.lane.b32.xlu1 %v894_v5, %s2361_s11  ;;  %739 = vrot.lane.b32.xlu0 %v688_v12, %s2358_s24  ;;  %v2270_v12 = vunpack.i.h.bf16 %v2477_v36  ;;  %v896_v5 = vrot.slane %v2508_v4, 2  ;;  %v830_v36 = vor.u32 %v829_v37, %v828_v29 }
  0xeb   :  { %927 = vrot.lane.b32.xlu1 %v902_v21, %s2361_s11  ;;  %741 = vrot.lane.b32.xlu0 %v695_v18, %s2358_s24  ;;  %v2576_v18 = vpack.c.bf16 %v2275_v14, %v2270_v12  ;;  %v2260_v21 = vunpack.i.l.bf16 %v2490_v54  ;;  %v897_v54 = vrot.slane %v2518_v56, 2 }
  0xed   :  { %v2587_v31 = vpack.c.bf16 %v2260_v21, %v2255_v20  ;;  %v908_v20 = vrot.slane %v2576_v18, 2 }
  0xef   :  { %723 = vrot.lane.b32.xlu1 %v632_v27, %s2358_s24  ;;  %803 = vrot.lane.b32.xlu0 %v776_v28, %s2360_s1  ;;  %v708_v27 = vrot.slane %v706_v19, 1  ;;  %v713_v28 = vshll.u32 %v2576_v18, 16  ;;  %v650_v43 = vshll.u32 %v2587_v31, 16  ;;  %v771_v2 = vrot.slane %v2587_v31, 1 }
  0xf1   :  { %v709_v38 = vor.u32 %v708_v27, %v704_v25  ;;  %v832_v9 = vrot.slane %v650_v43, 2 }
  0xf3   :  { %725 = vrot.lane.b32.xlu1 %v639_v39, %s2358_s24  ;;  %805 = vrot.lane.b32.xlu0 %v777_v40, %s2360_s1  ;;  %v711_v39 = vshrl.u32 %v2576_v18, 16  ;;  %v715_v40 = vrot.slane %v713_v28, 1 }
  0xf5   :  { %v716_v55 = vor.u32 %v715_v40, %v711_v39  ;;  %v858_v1 = vrot.slane %v711_v39, 1  ;;  %v2363_v40 = vmov 1983009808  }
  0xf7   :  { %787 = vrot.lane.b32.xlu1 %v768_v49, %s2360_s1  ;;  %883 = vrot.lane.b32.xlu0 %v848_v6, %s2362_s12  ;;  %v648_v49 = vshrl.u32 %v2587_v31, 16  ;;  %v652_v6 = vrot.slane %v650_v43, 1  ;;  %v1111_v43 = vlaneseq }
  0xf9   :  { %v653_v50 = vor.u32 %v652_v6, %v648_v49 }
  0xfb   :  { %789 = vrot.lane.b32.xlu1 %v769_v58, %s2360_s1  ;;  %743 = vrot.lane.b32.xlu0 %v702_v23, %s2358_s24  ;;  %v657_v23 = vshll.u32 %v2595_v41, 16  ;;  %v655_v58 = vshrl.u32 %v2595_v41, 16 }
  0xfd   :  { %v659_v59 = vrot.slane %v657_v23, 1 }
  0xff   :  { %867 = vrot.lane.b32.xlu1 %v824_v62, %s2362_s12  ;;  %885 = vrot.lane.b32.xlu0 %v851_v63, %s2362_s12  ;;  %v660_v61 = vor.u32 %v659_v59, %v655_v58  ;;  %v780_v62 = vrot.slane %v2576_v18, 1  ;;  %v856_v63 = vrot.slane %v706_v19, 2 }
 0x101   :  { %v857_v3 = vor.u32 %v856_v63, %v855_v60 }
 0x103   :  { %727 = vrot.lane.b32.xlu1 %v646_v52, %s2358_s24  ;;  %931 = vrot.lane.b32.xlu0 %v904_v7, %s2361_s11  ;;  %v859_v52 = vrot.slane %v713_v28, 2  ;;  %v831_v7 = vrot.slane %v648_v49, 1  ;;  %v900_v28 = vrot.slane %v2595_v41, 2 }
 0x105   :  { %v860_v8 = vor.u32 %v859_v52, %v858_v1  ;;  %v833_v14 = vor.u32 %v832_v9, %v831_v7 }
 0x107   :  { %869 = vrot.lane.b32.xlu1 %v827_v10, %s2362_s12  ;;  %807 = vrot.lane.b32.xlu0 %v778_v11, %s2360_s1  ;;  %v834_v10 = vrot.slane %v655_v58, 1 }
 0x10b   :  { %915 = vrot.lane.b32.xlu1 %v896_v5, %s2361_s11  ;;  %933 = vrot.lane.b32.xlu0 %v905_v16, %s2361_s11  ;;  %v835_v5 = vrot.slane %v657_v23, 2 }
 0x10d   :  { %v836_v19 = vor.u32 %v835_v5, %v834_v10 }
 0x10f   :  { %791 = vrot.lane.b32.xlu1 %v770_v22, %s2360_s1  ;;  %887 = vrot.lane.b32.xlu0 %v854_v24, %s2362_s12  ;;  %v899_v24 = vrot.slane %v2587_v31, 2 }
 0x113   :  { %917 = vrot.lane.b32.xlu1 %v897_v54, %s2361_s11  ;;  %935 = vrot.lane.b32.xlu0 %v906_v34, %s2361_s11 }
 0x117   :  { %871 = vrot.lane.b32.xlu1 %v830_v36, %s2362_s12  ;;  %745 = vrot.lane.b32.xlu0 %v709_v38, %s2358_s24  ;;  %v1109_v36 = vunpack.c.l.s4 %v2363_v40 }
 0x119   :  { %v1110_v23 = vunpack.c.0.s8 %v1109_v36 }
 0x11b   :  { %919 = vrot.lane.b32.xlu1 %v898_v44, %s2361_s11  ;;  %747 = vrot.lane.b32.xlu0 %v716_v55, %s2358_s24 }
 0x11f   :  { %729 = vrot.lane.b32.xlu1 %v653_v50, %s2358_s24  ;;  %809 = vrot.lane.b32.xlu0 %v779_v51, %s2360_s1  ;;  %v1112_v50 = vshrl.u32 %v1111_v43, 7 }
 0x121   :  { %v2646_v63 = vsub.s32 %v1110_v23, %v1112_v50 }
 0x123   :  { %731 = vrot.lane.b32.xlu1 %v660_v61, %s2358_s24  ;;  %811 = vrot.lane.b32.xlu0 %v780_v62, %s2360_s1 }
 0x127   :  { %793 = vrot.lane.b32.xlu1 %v771_v2, %s2360_s1  ;;  %889 = vrot.lane.b32.xlu0 %v857_v3, %s2362_s12 }
 0x129   :  { %v798_v11 = vpop.permute.xlu0 %797  ;;  %v782_v12 = vpop.permute.xlu1 %781 }
 0x12b   :  { %795 = vrot.lane.b32.xlu1 %v772_v0, %s2360_s1  ;;  %891 = vrot.lane.b32.xlu0 %v860_v8, %s2362_s12 }
 0x12f   :  { %873 = vrot.lane.b32.xlu1 %v833_v14, %s2362_s12  ;;  %937 = vrot.lane.b32.xlu0 %v907_v15, %s2361_s11 }
 0x131   :  { %v786_v16 = vpop.permute.xlu0 %785  ;;  %v2621_v17 = vpop.permute.xlu1 %783 }
 0x133   :  { %875 = vrot.lane.b32.xlu1 %v836_v19, %s2362_s12  ;;  %939 = vrot.lane.b32.xlu0 %v908_v20, %s2361_s11 }
 0x135   :  { %v802_v21 = vpop.permute.xlu0 %801  ;;  %v2626_v22 = vpop.permute.xlu1 %799 }
 0x137   :  { %921 = vrot.lane.b32.xlu1 %v899_v24, %s2361_s11 }
 0x139   :  { %v910_v25 = vpop.permute.xlu1 %909  ;;  %v718_v27 = vpop.permute.xlu0 %717 }
 0x13a   :  { %v943_v55 = vsel %vm941_vm0, %v2412_v32, %v718_v27 }
 0x13b   :  { %923 = vrot.lane.b32.xlu1 %v900_v28, %s2361_s11  ;;  %v976_v6 = vsel %vm974_vm1, %v943_v55, %v782_v12 }
 0x13d   :  { %v734_v29 = vpop.permute.xlu1 %733  ;;  %v738_v30 = vpop.permute.xlu0 %737 }
 0x13e   :  { %v959_v58 = vsel %vm941_vm0, %v2414_v33, %v734_v29 }
 0x13f   :  { %v992_v61 = vsel %vm974_vm1, %v959_v58, %v798_v11 }
 0x141   :  { %v720_v35 = vpop.permute.xlu1 %719  ;;  %v878_v54 = vpop.permute.xlu0 %877 }
 0x142   :  { %v1025_v33 = vsel %vm1007_vm3, %v992_v61, %v878_v54  ;;  %v945_v8 = vsel %vm941_vm0, %v2420_v46, %v720_v35 }
 0x143   :  { %v978_v46 = vsel %vm974_vm1, %v945_v8, %v2621_v17 }
 0x145   :  { %v722_v34 = vpop.permute.xlu1 %721  ;;  %v866_v37 = vpop.permute.xlu0 %865 }
 0x146   :  { %v947_v44 = vsel %vm941_vm0, %v2422_v47, %v722_v34  ;;  %v963_v47 = vsel %vm941_vm0, %v2424_v48, %v738_v30 }
 0x147   :  { %v980_v59 = vsel %vm974_vm1, %v947_v44, %v786_v16  ;;  %v996_v0 = vsel %vm974_vm1, %v963_v47, %v802_v21 }
 0x148   :  { %v1013_v62 = vsel %vm1007_vm3, %v980_v59, %v866_v37 }
 0x149   :  { %v736_v38 = vpop.permute.xlu1 %735  ;;  %v882_v39 = vpop.permute.xlu0 %881 }
 0x14a   :  { %v1029_v9 = vsel %vm1007_vm3, %v996_v0, %v882_v39  ;;  %v961_v19 = vsel %vm941_vm0, %v2431_v53, %v736_v38 }
 0x14b   :  { %v994_v17 = vsel %vm974_vm1, %v961_v19, %v2626_v22 }
 0x14d   :  { %v862_v49 = vpop.permute.xlu1 %861  ;;  %v926_v51 = vpop.permute.xlu0 %925 }
 0x14e   :  { %v1009_v60 = vsel %vm1007_vm3, %v976_v6, %v862_v49  ;;  %v1058_v7 = vsel %vm1040_vm2, %v1025_v33, %v926_v51 }
 0x14f   :  { %v1042_v32 = vsel %vm1040_vm2, %v1009_v60, %v910_v25  ;;  %v1083_v14 = vsel %vm1073_vm4, %v1058_v7, 0 }
 0x150   :  { %v1075_v3 = vsel %vm1073_vm4, %v1042_v32, 0  ;;  %v1242_v21 = vrot.slane %v1083_v14, %v2646_v63  ;;  %v1235_v53 = vcombine.high %v1083_v14, %v1083_v14 }
 0x151   :  { %v864_v1 = vpop.permute.xlu1 %863  ;;  %v914_v2 = vpop.permute.xlu0 %913  ;;  %v1114_v12 = vrot.slane %v1075_v3, %v2646_v63  ;;  %v1107_v20 = vcombine.high %v1075_v3, %v1075_v3 }
 0x152   :  { %v1046_v52 = vsel %vm1040_vm2, %v1013_v62, %v914_v2  ;;  %v1011_v24 = vsel %vm1007_vm3, %v978_v46, %v864_v1  ;;  %v1250_v38 = vcombine.high %v1242_v21, %v1242_v21  ;;  %v1249_v32 = vrot.slane %v1235_v53, %v2646_v63 }
 0x153   :  { %v2654_v48 = vsel %vm1073_vm4, %v1046_v52, 0  ;;  %v1122_v28 = vcombine.high %v1114_v12, %v1114_v12  ;;  %v1121_v43 = vrot.slane %v1107_v20, %v2646_v63 }
 0x154   :  { %v1146_v5 = vrot.slane %v2654_v48, %v2646_v63  ;;  %v1465_v2 = vcombine.low %v1242_v21, %v1250_v38 }
 0x155   :  { %v880_v10 = vpop.permute.xlu1 %879  ;;  %v930_v11 = vpop.permute.xlu0 %929  ;;  %v1363_v55 = vcombine.low %v1114_v12, %v1122_v28 }
 0x156   :  { %v1062_v15 = vsel %vm1040_vm2, %v1029_v9, %v930_v11  ;;  %v1154_v35 = vcombine.high %v1146_v5, %v1146_v5  ;;  %v1027_v39 = vsel %vm1007_vm3, %v994_v17, %v880_v10 }
 0x157   :  { %v2665_v16 = vsel %vm1073_vm4, %v1062_v15, 0  ;;  %v1371_v62 = vrot.slane %v1363_v55, %v2646_v63  ;;  %v1473_v15 = vrot.slane %v1465_v2, %v2646_v63 }
 0x158   :  { %v1274_v29 = vrot.slane %v2665_v16, %v2646_v63  ;;  %v1381_v50 = vcombine.low %v1146_v5, %v1154_v35  ;;  %v1267_v17 = vcombine.high %v2665_v16, %v2665_v16 }
 0x159   :  { %v912_v25 = vpop.permute.xlu1 %911  ;;  %v740_v27 = vpop.permute.xlu0 %739 }
 0x15a   :  { %v1044_v30 = vsel %vm1040_vm2, %v1011_v24, %v912_v25  ;;  %v1282_v44 = vcombine.high %v1274_v29, %v1274_v29  ;;  %v1395_v8 = vrot.slane %v1381_v50, %v2646_v63 }
 0x15b   :  { %v1076_v54 = vsel %vm1073_vm4, %v1044_v30, 0 }
 0x15c   :  { %v1123_v34 = vcombine.high %v1076_v54, %v1076_v54  ;;  %v1130_v37 = vrot.slane %v1076_v54, %v2646_v63  ;;  %v1483_v33 = vcombine.low %v1274_v29, %v1282_v44  ;;  %v965_v54 = vsel %vm941_vm0, %v2484_v42, %v740_v27 }
 0x15d   :  { %v928_v40 = vpop.permute.xlu1 %927  ;;  %v742_v36 = vpop.permute.xlu0 %741  ;;  %v1281_v44 = vrot.slane %v1267_v17, %v2646_v63 }
 0x15e   :  { %v1137_v49 = vrot.slane %v1123_v34, %v2646_v63  ;;  %v1138_v6 = vcombine.high %v1130_v37, %v1130_v37  ;;  %v1060_v23 = vsel %vm1040_vm2, %v1027_v39, %v928_v40  ;;  %v1364_v51 = vcombine.low %v1121_v43, %v1130_v37 }
 0x15f   :  { %v1084_v22 = vsel %vm1073_vm4, %v1060_v23, 0  ;;  %v1497_v46 = vrot.slane %v1483_v33, %v2646_v63  ;;  %v967_v16 = vsel %vm941_vm0, %v2496_v57, %v742_v36 }
 0x160   :  { %v1380_v58 = vcombine.low %v1138_v6, %v1137_v49  ;;  %v1251_v59 = vcombine.high %v1084_v22, %v1084_v22  ;;  %v1258_v60 = vrot.slane %v1084_v22, %v2646_v63  ;;  %v1378_v1 = vrot.slane %v1364_v51, %v2646_v63 }
 0x161   :  { %v724_v47 = vpop.permute.xlu1 %723  ;;  %v804_v61 = vpop.permute.xlu0 %803 }
 0x162   :  { %v1265_v3 = vrot.slane %v1251_v59, %v2646_v63  ;;  %v1266_v52 = vcombine.high %v1258_v60, %v1258_v60  ;;  %v1379_v7 = vcombine.low %v1371_v62, %v1378_v1  ;;  %v1388_v0 = vrot.slane %v1380_v58, %v2646_v63 }
 0x163   :  { %v1466_v9 = vcombine.low %v1249_v32, %v1258_v60  ;;  %v998_v53 = vsel %vm974_vm1, %v965_v54, %v804_v61  ;;  %v949_v23 = vsel %vm941_vm0, %v2508_v4, %v724_v47  ;;  %v1139_v59 = vcombine.high %v2654_v48, %v2654_v48 }
 0x164   :  { %v1482_v10 = vcombine.low %v1266_v52, %v1265_v3  ;;  %2129 = vmatprep.mubr.bf16.mxu0 %v1379_v7  ;;  %v1396_v14 = vcombine.low %v1388_v0, %v1395_v8 }
 0x165   :  { %v726_v11 = vpop.permute.xlu1 %725  ;;  %v806_v12 = vpop.permute.xlu0 %805  ;;  %v1480_v5 = vrot.slane %v1466_v9, %v2646_v63  ;;  %v1153_v3 = vrot.slane %v1139_v59, %v2646_v63 }
 0x166   :  { %v1490_v19 = vrot.slane %v1482_v10, %v2646_v63  ;;  %2130 = vmatmul.mubr.bf16.vlgmr.msra.gmra.mrb[0].mxu0 %v1396_v14  ;;  %v1000_v22 = vsel %vm974_vm1, %v967_v16, %v806_v12  ;;  %v951_v12 = vsel %vm941_vm0, %v2518_v56, %v726_v11 }
 0x167   :  { %v1481_v20 = vcombine.low %v1473_v15, %v1480_v5 }
 0x168   :  { %v1498_v21 = vcombine.low %v1490_v19, %v1497_v46 }
 0x169   :  { %2141 = vmatprep.mubr.bf16.mxu1 %v1481_v20  ;;  %v788_v24 = vpop.permute.xlu1 %787  ;;  %v884_v25 = vpop.permute.xlu0 %883 }
 0x16a   :  { %2142 = vmatmul.mubr.bf16.vlgmr.msra.gmra.mrb[0].mxu1 %v1498_v21  ;;  %v1031_v34 = vsel %vm1007_vm3, %v998_v53, %v884_v25  ;;  %v982_v51 = vsel %vm974_vm1, %v949_v23, %v788_v24 }
 0x16d   :  { %v790_v28 = vpop.permute.xlu1 %789  ;;  %v744_v29 = vpop.permute.xlu0 %743 }
 0x16e   :  { %v969_v14 = vsel %vm941_vm0, %v2531_v26, %v744_v29  ;;  %v984_v5 = vsel %vm974_vm1, %v951_v12, %v790_v28 }
 0x171   :  { %v868_v30 = vpop.permute.xlu1 %867  ;;  %v886_v35 = vpop.permute.xlu0 %885 }
 0x172   :  { %v1015_v60 = vsel %vm1007_vm3, %v982_v51, %v868_v30  ;;  %v1033_v32 = vsel %vm1007_vm3, %v1000_v22, %v886_v35 }
 0x175   :  { %v2702_v37 = vpop.permute.xlu1 %727  ;;  %v932_v38 = vpop.permute.xlu0 %931 }
 0x176   :  { %v1064_v39 = vsel %vm1040_vm2, %v1031_v34, %v932_v38 }
 0x177   :  { %v1086_v40 = vsel %vm1073_vm4, %v1064_v39, 0 }
 0x178   :  { %v1283_v43 = vcombine.high %v1086_v40, %v1086_v40  ;;  %v1290_v55 = vrot.slane %v1086_v40, %v2646_v63 }
 0x179   :  { %v870_v42 = vpop.permute.xlu1 %869  ;;  %v808_v27 = vpop.permute.xlu0 %807 }
 0x17a   :  { %v1297_v49 = vrot.slane %v1283_v43, %v2646_v63  ;;  %v1298_v6 = vcombine.high %v1290_v55, %v1290_v55  ;;  %v1499_v50 = vcombine.low %v1281_v44, %v1290_v55  ;;  %v1002_v19 = vsel %vm974_vm1, %v969_v14, %v808_v27 }
 0x17b   :  { %v1017_v20 = vsel %vm1007_vm3, %v984_v5, %v870_v42  ;;  %v953_v55 = vsel %vm941_vm0, %v2546_v45, %v2702_v37 }
 0x17c   :  { %v1500_v58 = vcombine.low %v1298_v6, %v1297_v49  ;;  %v1507_v2 = vrot.slane %v1499_v50, %v2646_v63 }
 0x17d   :  { %v916_v61 = vpop.permute.xlu1 %915  ;;  %v934_v62 = vpop.permute.xlu0 %933 }
 0x17e   :  { %v1048_v57 = vsel %vm1040_vm2, %v1015_v60, %v916_v61  ;;  %v1066_v36 = vsel %vm1040_vm2, %v1033_v32, %v934_v62  ;;  %v1514_v4 = vrot.slane %v1500_v58, %v2646_v63 }
 0x17f   :  { %v1078_v47 = vsel %vm1073_vm4, %v1048_v57, 0  ;;  %v1087_v1 = vsel %vm1073_vm4, %v1066_v36, 0 }
 0x180   :  { %v1155_v33 = vcombine.high %v1078_v47, %v1078_v47  ;;  %v1162_v48 = vrot.slane %v1078_v47, %v2646_v63  ;;  %v1306_v52 = vrot.slane %v1087_v1, %v2646_v63  ;;  %v1515_v8 = vcombine.low %v1507_v2, %v1514_v4 }
 0x181   :  { %v792_v7 = vpop.permute.xlu1 %791  ;;  %v888_v0 = vpop.permute.xlu0 %887  ;;  %v1299_v21 = vcombine.high %v1087_v1, %v1087_v1 }
 0x182   :  { %v1169_v9 = vrot.slane %v1155_v33, %v2646_v63  ;;  %v1170_v10 = vcombine.high %v1162_v48, %v1162_v48  ;;  %v1397_v15 = vcombine.low %v1153_v3, %v1162_v48  ;;  %2145 = vmatprep.mubr.bf16.mxu1 %v1515_v8  ;;  %v1314_v24 = vcombine.high %v1306_v52, %v1306_v52 }
 0x183   :  { %v1035_v25 = vsel %vm1007_vm3, %v1002_v19, %v888_v0  ;;  %v1313_v34 = vrot.slane %v1299_v21, %v2646_v63  ;;  %v986_v42 = vsel %vm974_vm1, %v953_v55, %v792_v7 }
 0x184   :  { %v1398_v46 = vcombine.low %v1170_v10, %v1169_v9  ;;  %v1405_v54 = vrot.slane %v1397_v15, %v2646_v63  ;;  %v1516_v38 = vcombine.low %v1306_v52, %v1314_v24 }
 0x185   :  { %v918_v30 = vpop.permute.xlu1 %917  ;;  %v936_v35 = vpop.permute.xlu0 %935 }
 0x186   :  { %v1050_v56 = vsel %vm1040_vm2, %v1017_v20, %v918_v30  ;;  %v1068_v11 = vsel %vm1040_vm2, %v1035_v25, %v936_v35  ;;  %v1412_v26 = vrot.slane %v1398_v46, %v2646_v63  ;;  %v1524_v50 = vrot.slane %v1516_v38, %v2646_v63 }
 0x187   :  { %v1079_v29 = vsel %vm1073_vm4, %v1050_v56, 0  ;;  %v1088_v28 = vsel %vm1073_vm4, %v1068_v11, 0 }
 0x188   :  { %v1178_v53 = vrot.slane %v1079_v29, %v2646_v63  ;;  %v1322_v17 = vrot.slane %v1088_v28, %v2646_v63  ;;  %v1413_v43 = vcombine.low %v1405_v54, %v1412_v26  ;;  %v1171_v27 = vcombine.high %v1079_v29, %v1079_v29 }
 0x189   :  { %v872_v39 = vpop.permute.xlu1 %871  ;;  %v746_v40 = vpop.permute.xlu0 %745  ;;  %v1315_v52 = vcombine.high %v1088_v28, %v1088_v28 }
 0x18a   :  { %v1517_v44 = vcombine.low %v1313_v34, %v1322_v17  ;;  %2133 = vmatprep.mubr.bf16.mxu0 %v1413_v43  ;;  %v1186_v49 = vcombine.high %v1178_v53, %v1178_v53  ;;  %v1019_v6 = vsel %vm1007_vm3, %v986_v42, %v872_v39  ;;  %v1185_v45 = vrot.slane %v1171_v27, %v2646_v63 }
 0x18b   :  { %v971_v7 = vsel %vm941_vm0, %v2569_v13, %v746_v40  ;;  %v1329_v14 = vrot.slane %v1315_v52, %v2646_v63  ;;  %v1330_v15 = vcombine.high %v1322_v17, %v1322_v17 }
 0x18c   :  { %v1531_v22 = vrot.slane %v1517_v44, %v2646_v63  ;;  %v1414_v37 = vcombine.low %v1178_v53, %v1186_v49 }
 0x18d   :  { %v920_v16 = vpop.permute.xlu1 %919  ;;  %v748_v23 = vpop.permute.xlu0 %747  ;;  %v1533_v26 = vcombine.low %v1330_v15, %v1329_v14 }
 0x18e   :  { %v1052_v51 = vsel %vm1040_vm2, %v1019_v6, %v920_v16  ;;  %v1532_v59 = vcombine.low %v1524_v50, %v1531_v22  ;;  %v1422_v57 = vrot.slane %v1414_v37, %v2646_v63  ;;  %v973_v5 = vsel %vm941_vm0, %v2576_v18, %v748_v23 }
 0x18f   :  { %v1080_v58 = vsel %vm1073_vm4, %v1052_v51, 0  ;;  %v1541_v49 = vrot.slane %v1533_v26, %v2646_v63 }
 0x190   :  { %v1194_v60 = vrot.slane %v1080_v58, %v2646_v63  ;;  %2146 = vmatmul.mubr.bf16.gmra.mrb[4].mxu1 %v1532_v59  ;;  %v1187_v21 = vcombine.high %v1080_v58, %v1080_v58 }
 0x191   :  { %v730_v32 = vpop.permute.xlu1 %729  ;;  %v810_v61 = vpop.permute.xlu0 %809 }
 0x192   :  { %v1415_v62 = vcombine.low %v1185_v45, %v1194_v60  ;;  %v1004_v0 = vsel %vm974_vm1, %v971_v7, %v810_v61  ;;  %v955_v35 = vsel %vm941_vm0, %v2587_v31, %v730_v32  ;;  %v1201_v34 = vrot.slane %v1187_v21, %v2646_v63 }
 0x193   :  { %v1202_v38 = vcombine.high %v1194_v60, %v1194_v60 }
 0x194   :  { %v1429_v36 = vrot.slane %v1415_v62, %v2646_v63 }
 0x195   :  { %v732_v4 = vpop.permute.xlu1 %731  ;;  %v812_v47 = vpop.permute.xlu0 %811  ;;  %v1431_v51 = vcombine.low %v1202_v38, %v1201_v34 }
 0x196   :  { %v1430_v1 = vcombine.low %v1422_v57, %v1429_v36  ;;  %v1006_v46 = vsel %vm974_vm1, %v973_v5, %v812_v47  ;;  %v957_v42 = vsel %vm941_vm0, %v2595_v41, %v732_v4 }
 0x198   :  { %2134 = vmatmul.mubr.bf16.gmra.mrb[4].mxu0 %v1430_v1  ;;  %v1439_v1 = vrot.slane %v1431_v51, %v2646_v63 }
 0x199   :  { %v794_v2 = vpop.permute.xlu1 %793  ;;  %v890_v33 = vpop.permute.xlu0 %889 }
 0x19a   :  { %v1037_v8 = vsel %vm1007_vm3, %v1004_v0, %v890_v33  ;;  %v988_v18 = vsel %vm974_vm1, %v955_v35, %v794_v2 }
 0x19d   :  { %v796_v48 = vpop.permute.xlu1 %795  ;;  %v892_v3 = vpop.permute.xlu0 %891 }
 0x19e   :  { %v1039_v24 = vsel %vm1007_vm3, %v1006_v46, %v892_v3  ;;  %v990_v16 = vsel %vm974_vm1, %v957_v42, %v796_v48 }
 0x1a1   :  { %v874_v9 = vpop.permute.xlu1 %873  ;;  %v938_v10 = vpop.permute.xlu0 %937 }
 0x1a2   :  { %v1070_v12 = vsel %vm1040_vm2, %v1037_v8, %v938_v10  ;;  %v1021_v39 = vsel %vm1007_vm3, %v988_v18, %v874_v9 }
 0x1a3   :  { %v1089_v19 = vsel %vm1073_vm4, %v1070_v12, 0 }
 0x1a4   :  { %v1331_v20 = vcombine.high %v1089_v19, %v1089_v19  ;;  %v1338_v13 = vrot.slane %v1089_v19, %v2646_v63 }
 0x1a5   :  { %v876_v25 = vpop.permute.xlu1 %875  ;;  %v940_v30 = vpop.permute.xlu0 %939 }
 0x1a6   :  { %v1346_v56 = vcombine.high %v1338_v13, %v1338_v13  ;;  %v1072_v11 = vsel %vm1040_vm2, %v1039_v24, %v940_v30  ;;  %v1345_v28 = vrot.slane %v1331_v20, %v2646_v63  ;;  %v1023_v58 = vsel %vm1007_vm3, %v990_v16, %v876_v25 }
 0x1a7   :  { %v1090_v29 = vsel %vm1073_vm4, %v1072_v11, 0 }
 0x1a8   :  { %v1534_v54 = vcombine.low %v1338_v13, %v1346_v56  ;;  %v1347_v53 = vcombine.high %v1090_v29, %v1090_v29  ;;  %v1354_v17 = vrot.slane %v1090_v29, %v2646_v63 }
 0x1a9   :  { %v922_v31 = vpop.permute.xlu1 %921 }
 0x1aa   :  { %v1361_v40 = vrot.slane %v1347_v53, %v2646_v63  ;;  %v1362_v43 = vcombine.high %v1354_v17, %v1354_v17  ;;  %v1550_v55 = vcombine.low %v1345_v28, %v1354_v17  ;;  %v1054_v44 = vsel %vm1040_vm2, %v1021_v39, %v922_v31 }
 0x1ab   :  { %v1081_v27 = vsel %vm1073_vm4, %v1054_v44, 0  ;;  %v1548_v6 = vrot.slane %v1534_v54, %v2646_v63 }
 0x1ac   :  { %v1551_v23 = vcombine.low %v1362_v43, %v1361_v40  ;;  %v1203_v50 = vcombine.high %v1081_v27, %v1081_v27  ;;  %v1210_v22 = vrot.slane %v1081_v27, %v2646_v63  ;;  %v1558_v60 = vrot.slane %v1550_v55, %v2646_v63 }
 0x1ad   :  { %v924_v59 = vpop.permute.xlu1 %923  ;;  %v1549_v45 = vcombine.low %v1541_v49, %v1548_v6 }
 0x1ae   :  { %v1218_v37 = vcombine.high %v1210_v22, %v1210_v22  ;;  %v1056_v41 = vsel %vm1040_vm2, %v1023_v58, %v924_v59  ;;  %v1565_v32 = vrot.slane %v1551_v23, %v2646_v63  ;;  %v1217_v61 = vrot.slane %v1203_v50, %v2646_v63 }
 0x1af   :  { %v1082_v62 = vsel %vm1073_vm4, %v1056_v41, 0  ;;  %2149 = vmatprep.mubr.bf16.mxu1 %v1549_v45 }
 0x1b0   :  { %v1432_v57 = vcombine.low %v1210_v22, %v1218_v37  ;;  %v1219_v36 = vcombine.high %v1082_v62, %v1082_v62  ;;  %v1226_v4 = vrot.slane %v1082_v62, %v2646_v63  ;;  %v1566_v47 = vcombine.low %v1558_v60, %v1565_v32  ;;  %v2810_v37 = vld [vmem:[%s2892_s2] ss:$0 sm:$0xff]  ;;  %s2364_s2 = smov [#allocation7]  }
 0x1b1   :  { %s2071_s15 = sshll.u32 %s2364_s2, 4  ;;  %s2072_s15 = int_to_ptr.vmem [resolvable:$true] %s2071_s15 }
 0x1b2   :  { %v1233_v2 = vrot.slane %v1219_v36, %v2646_v63  ;;  %v1234_v33 = vcombine.high %v1226_v4, %v1226_v4  ;;  %v1448_v48 = vcombine.low %v1217_v61, %v1226_v4  ;;  %2150 = vmatmul.mubr.bf16.gmra.mrb[8].mxu1 %v1566_v47  ;;  %v1446_v3 = vrot.slane %v1432_v57, %v2646_v63  ;;  %s2328_s16 = scalar_lea.vmem %s2072_s15, 256  ;;  %p2333_p3 = scmp.lt.s32.totalorder %s2072_s15, %s2072_s15 }
 0x1b3   :  { %p2329_p2 = scmp.ne.s32.totalorder %s2072_s15, %s2328_s16  ;;  %p2334_p4 = scmp.lt.s32.totalorder %s2328_s16, %s2328_s16 }
 0x1b4   :  { %v1449_v52 = vcombine.low %v1234_v33, %v1233_v2  ;;  %v1447_v7 = vcombine.low %v1439_v1, %v1446_v3  ;;  %v1456_v0 = vrot.slane %v1448_v48, %v2646_v63 }
 0x1b5   :  { %p2335_p5 = por %p2334_p4, %p2333_p3 }
 0x1b6   :  { %2137 = vmatprep.mubr.bf16.mxu0 %v1447_v7  ;;  %v1463_v8 = vrot.slane %v1449_v52, %v2646_v63 }
 0x1b7   :  { %p2336_p6 = pnand %p2335_p5, %p2329_p2 }
 0x1b8   :  { %v1464_v9 = vcombine.low %v1456_v0, %v1463_v8 }
 0x1ba   :  { %2138 = vmatmul.mubr.bf16.gmra.mrb[8].mxu0 %v1464_v9 }
 0x239   :  { %v2131_v10 = vpop.f32.mrb[0].mxu0 }
 0x23a   :  { %v1661_v12 = vpop.f32.mrb[1].mxu0  ;;  %v1782_v5 = vcombine.high %v2131_v10, %v2131_v10 }
 0x23b   :  { %v1780_v14 = vcombine.high %v1661_v12, %v1661_v12  ;;  %v2801_v15 = vpop.f32.mrb[2].mxu0 }
 0x23c   :  { %v1664_v19 = vpop.f32.mrb[3].mxu0  ;;  %v1853_v26 = vsel %vm1844_vm5, %v1782_v5, -inf }
 0x23d   :  { %v2143_v46 = vpop.f32.mrb[0].mxu1  ;;  %v1812_v20 = vcombine.low %v1661_v12, %v1780_v14  ;;  %v1781_v13 = vcombine.high %v1664_v19, %v1664_v19  ;;  %v1845_v21 = vsel %vm1844_vm5, %v1664_v19, -inf }
 0x23e   :  { %v1709_v24 = vpop.f32.mrb[1].mxu1  ;;  %v1794_v56 = vcombine.high %v2143_v46, %v2143_v46 }
 0x23f   :  { %v1792_v25 = vcombine.high %v1709_v24, %v1709_v24  ;;  %v2144_v30 = vpop.f32.mrb[2].mxu1  ;;  %v1813_v35 = vcombine.low %v1781_v13, %v2131_v10  ;;  %v1846_v63 = vmax.f32 %v1812_v20, %v1845_v21 }
 0x240   :  { %v1712_v11 = vpop.f32.mrb[3].mxu1  ;;  %v1917_v31 = vsel %vm1844_vm5, %v1794_v56, -inf  ;;  %v1795_v9 = vcombine.high %v2144_v30, %v2144_v30 }
 0x241   :  { %v1820_v18 = vcombine.low %v1709_v24, %v1792_v25  ;;  %v1793_v29 = vcombine.high %v1712_v11, %v1712_v11  ;;  %v1909_v28 = vsel %vm1844_vm5, %v1712_v11, -inf  ;;  %v1847_v54 = vrot.slane %v1846_v63, 4 }
 0x242   :  { %v1854_v53 = vmax.f32 %v1813_v35, %v1853_v26  ;;  %v1822_v12 = vcombine.low %v2144_v30, %v1795_v9  ;;  %v1783_v35 = vcombine.high %v2801_v15, %v2801_v15 }
 0x243   :  { %v1821_v17 = vcombine.low %v1793_v29, %v2143_v46  ;;  %v1910_v34 = vmax.f32 %v1820_v18, %v1909_v28  ;;  %v1848_v38 = vmax.f32 %v1846_v63, %v1847_v54 }
 0x244   :  { %v1855_v39 = vrot.slane %v1854_v53, 4 }
 0x245   :  { %v1911_v40 = vrot.slane %v1910_v34, 4  ;;  %v1918_v43 = vmax.f32 %v1821_v17, %v1917_v31  ;;  %v1849_v55 = vrot.slane %v1848_v38, 2 }
 0x246   :  { %v1856_v44 = vmax.f32 %v1854_v53, %v1855_v39  ;;  %v1814_v53 = vcombine.low %v2801_v15, %v1783_v35 }
 0x247   :  { %v1912_v42 = vmax.f32 %v1910_v34, %v1911_v40  ;;  %v1919_v27 = vrot.slane %v1918_v43, 4  ;;  %v1850_v49 = vmax.f32 %v1848_v38, %v1849_v55 }
 0x248   :  { %v1857_v6 = vrot.slane %v1856_v44, 2 }
 0x249   :  { %v1913_v16 = vrot.slane %v1912_v42, 2  ;;  %v1920_v23 = vmax.f32 %v1918_v43, %v1919_v27  ;;  %v1851_v50 = vrot.slane %v1850_v49, 1 }
 0x24a   :  { %v1858_v22 = vmax.f32 %v1856_v44, %v1857_v6 }
 0x24b   :  { %v1914_v51 = vmax.f32 %v1912_v42, %v1913_v16  ;;  %v1921_v58 = vrot.slane %v1920_v23, 2  ;;  %v1852_v59 = vmax.f32 %v1850_v49, %v1851_v50 }
 0x24c   :  { %v1859_v45 = vrot.slane %v1858_v22, 1 }
 0x24d   :  { %v1915_v41 = vrot.slane %v1914_v51, 1  ;;  %v1922_v60 = vmax.f32 %v1920_v23, %v1921_v58  ;;  %v1979_v57 = vadd.f32 %v2810_v37, %v1852_v59 }
 0x24e   :  { %v1860_v32 = vmax.f32 %v1858_v22, %v1859_v45 }
 0x24f   :  { %v1916_v61 = vmax.f32 %v1914_v51, %v1915_v41  ;;  %v1923_v62 = vrot.slane %v1922_v60, 1  ;;  %v1995_v33 = vmax.f32 %v1979_v57, 0.0 }
 0x250   :  { %v1980_v36 = vadd.f32 %v2810_v37, %v1860_v32 }
 0x251   :  { %v1924_v4 = vmax.f32 %v1922_v60, %v1923_v62  ;;  %v1987_v1 = vadd.f32 %v2810_v37, %v1916_v61 }
 0x252   :  { %v1996_v47 = vmax.f32 %v1980_v36, 0.0 }
 0x253   :  { %v1988_v2 = vadd.f32 %v2810_v37, %v1924_v4  ;;  %v2003_v7 = vmax.f32 %v1987_v1, 0.0 }
 0x254   :  { %v2027_v48 = vrot.slane %v1996_v47, 7 }
 0x255   :  { %v2004_v3 = vmax.f32 %v1988_v2, 0.0 }
 0x256   :  { %v2816_v52 = vsel %vm2028_vm6, %v2027_v48, %v1995_v33 }
 0x257   :  { %v2048_v0 = vrot.slane %v2004_v3, 7 }
 0x259   :  { %v2818_v8 = vsel %vm2028_vm6, %v2048_v0, %v2003_v7 }
 0x263   :  { %v2147_v10 = vpop.f32.mrb[4].mxu1 }
 0x264   :  { %v1798_v14 = vcombine.high %v2147_v10, %v2147_v10  ;;  %v1725_v5 = vpop.f32.mrb[5].mxu1 }
 0x265   :  { %v1796_v19 = vcombine.high %v1725_v5, %v1725_v5  ;;  %v1925_v46 = vsel %vm1844_vm5, %v1725_v5, -inf  ;;  %v2821_v20 = vpop.f32.mrb[6].mxu1 }
 0x266   :  { %v1824_v13 = vcombine.low %v2147_v10, %v1798_v14  ;;  %v1926_v21 = vmax.f32 %v1822_v12, %v1925_v46  ;;  %v1941_v24 = vsel %vm1844_vm5, %v2821_v20, -inf  ;;  %v1728_v25 = vpop.f32.mrb[7].mxu1 }
 0x267   :  { %v1797_v63 = vcombine.high %v1728_v25, %v1728_v25  ;;  %v1823_v56 = vcombine.low %v1796_v19, %v1728_v25 }
 0x268   :  { %v1927_v11 = vrot.slane %v1926_v21, 4  ;;  %v1942_v30 = vmax.f32 %v1824_v13, %v1941_v24 }
 0x269   :  { %v1933_v26 = vsel %vm1844_vm5, %v1797_v63, -inf }
 0x26a   :  { %v1928_v18 = vmax.f32 %v1926_v21, %v1927_v11  ;;  %v1943_v29 = vrot.slane %v1942_v30, 4  ;;  %v1934_v28 = vmax.f32 %v1823_v56, %v1933_v26 }
 0x26b   :  { %v2135_v54 = vpop.f32.mrb[4].mxu0 }
 0x26c   :  { %v1786_v17 = vcombine.high %v2135_v54, %v2135_v54  ;;  %v1677_v34 = vpop.f32.mrb[5].mxu0  ;;  %v1929_v38 = vrot.slane %v1928_v18, 2  ;;  %v1944_v39 = vmax.f32 %v1942_v30, %v1943_v29  ;;  %v1935_v31 = vrot.slane %v1934_v28, 4 }
 0x26d   :  { %v1784_v40 = vcombine.high %v1677_v34, %v1677_v34  ;;  %v2829_v43 = vpop.f32.mrb[6].mxu0  ;;  %v1861_v44 = vsel %vm1844_vm5, %v1677_v34, -inf }
 0x26e   :  { %v1816_v55 = vcombine.low %v2135_v54, %v1786_v17  ;;  %v1877_v42 = vsel %vm1844_vm5, %v2829_v43, -inf  ;;  %v1680_v27 = vpop.f32.mrb[7].mxu0  ;;  %v1930_v49 = vmax.f32 %v1928_v18, %v1929_v38  ;;  %v1945_v6 = vrot.slane %v1944_v39, 2 }
 0x26f   :  { %v1936_v16 = vmax.f32 %v1934_v28, %v1935_v31  ;;  %v1862_v23 = vmax.f32 %v1814_v53, %v1861_v44  ;;  %v1785_v50 = vcombine.high %v1680_v27, %v1680_v27  ;;  %v1815_v22 = vcombine.low %v1784_v40, %v1680_v27 }
 0x270   :  { %v1878_v15 = vmax.f32 %v1816_v55, %v1877_v42  ;;  %v1931_v51 = vrot.slane %v1930_v49, 1  ;;  %v1946_v58 = vmax.f32 %v1944_v39, %v1945_v6  ;;  %v1799_v55 = vcombine.high %v2821_v20, %v2821_v20 }
 0x271   :  { %v1937_v59 = vrot.slane %v1936_v16, 2  ;;  %v1863_v45 = vrot.slane %v1862_v23, 4  ;;  %v1869_v60 = vsel %vm1844_vm5, %v1785_v50, -inf }
 0x272   :  { %v1879_v41 = vrot.slane %v1878_v15, 4  ;;  %v1932_v32 = vmax.f32 %v1930_v49, %v1931_v51  ;;  %v1947_v61 = vrot.slane %v1946_v58, 1  ;;  %v1870_v4 = vmax.f32 %v1815_v22, %v1869_v60 }
 0x273   :  { %v1938_v62 = vmax.f32 %v1936_v16, %v1937_v59  ;;  %v1864_v57 = vmax.f32 %v1862_v23, %v1863_v45 }
 0x274   :  { %v1880_v36 = vmax.f32 %v1878_v15, %v1879_v41  ;;  %v1989_v47 = vadd.f32 %v2810_v37, %v1932_v32  ;;  %v1948_v1 = vmax.f32 %v1946_v58, %v1947_v61  ;;  %v1871_v3 = vrot.slane %v1870_v4, 4 }
 0x275   :  { %v1939_v2 = vrot.slane %v1938_v62, 1  ;;  %v1865_v33 = vrot.slane %v1864_v57, 2 }
 0x276   :  { %v1881_v48 = vrot.slane %v1880_v36, 2  ;;  %v2005_v7 = vmax.f32 %v1989_v47, 0.0  ;;  %v1991_v0 = vadd.f32 %v2810_v37, %v1948_v1  ;;  %v1872_v14 = vmax.f32 %v1870_v4, %v1871_v3 }
 0x277   :  { %v1940_v9 = vmax.f32 %v1938_v62, %v1939_v2  ;;  %v1866_v10 = vmax.f32 %v1864_v57, %v1865_v33  ;;  %v1787_v57 = vcombine.high %v2829_v43, %v2829_v43 }
 0x278   :  { %v1882_v12 = vmax.f32 %v1880_v36, %v1881_v48  ;;  %v2050_v5 = vrot.slane %v2005_v7, 6  ;;  %v2007_v13 = vmax.f32 %v1991_v0, 0.0  ;;  %v1873_v24 = vrot.slane %v1872_v14, 2 }
 0x279   :  { %v1990_v19 = vadd.f32 %v2810_v37, %v1940_v9  ;;  %v1867_v46 = vrot.slane %v1866_v10, 1 }
 0x27a   :  { %v1883_v21 = vrot.slane %v1882_v12, 1  ;;  %v2051_v25 = vsel %vm2031_vm7, %v2050_v5, %v2818_v8  ;;  %v1874_v11 = vmax.f32 %v1872_v14, %v1873_v24  ;;  %v2054_v18 = vrot.slane %v2007_v13, 4 }
 0x27b   :  { %v2006_v35 = vmax.f32 %v1990_v19, 0.0  ;;  %v1868_v63 = vmax.f32 %v1866_v10, %v1867_v46 }
 0x27c   :  { %v1884_v56 = vmax.f32 %v1882_v12, %v1883_v21  ;;  %v1875_v29 = vrot.slane %v1874_v11, 1 }
 0x27d   :  { %v2052_v30 = vrot.slane %v2006_v35, 5  ;;  %v1981_v26 = vadd.f32 %v2810_v37, %v1868_v63 }
 0x27e   :  { %v1983_v53 = vadd.f32 %v2810_v37, %v1884_v56  ;;  %v1876_v17 = vmax.f32 %v1874_v11, %v1875_v29 }
 0x27f   :  { %v2053_v28 = vsel %vm2034_vm8, %v2052_v30, %v2051_v25  ;;  %v1997_v54 = vmax.f32 %v1981_v26, 0.0 }
 0x280   :  { %v2844_v34 = vsel %vm2037_vm9, %v2054_v18, %v2053_v28  ;;  %v1982_v38 = vadd.f32 %v2810_v37, %v1876_v17  ;;  %v1999_v31 = vmax.f32 %v1983_v53, 0.0 }
 0x281   :  { %v2030_v8 = vrot.slane %v1997_v54, 6 }
 0x282   :  { %v1998_v40 = vmax.f32 %v1982_v38, 0.0  ;;  %v2036_v6 = vrot.slane %v1999_v31, 4 }
 0x283   :  { %v2032_v39 = vsel %vm2031_vm7, %v2030_v8, %v2816_v52 }
 0x284   :  { %v2033_v42 = vrot.slane %v1998_v40, 5 }
 0x285   :  { %v2151_v44 = vpop.f32.mrb[8].mxu1 }
 0x286   :  { %v1802_v27 = vcombine.high %v2151_v44, %v2151_v44  ;;  %v1741_v49 = vpop.f32.mrb[9].mxu1  ;;  %v2035_v50 = vsel %vm2034_vm8, %v2033_v42, %v2032_v39  ;;  %v1957_v61 = vsel %vm1844_vm5, %v2151_v44, -inf }
 0x287   :  { %v1800_v16 = vcombine.high %v1741_v49, %v1741_v49  ;;  %v1825_v23 = vcombine.low %v1799_v55, %v1741_v49  ;;  %v2152_v15 = vpop.f32.mrb[10].mxu1  ;;  %v2854_v45 = vsel %vm2037_vm9, %v2036_v6, %v2035_v50 }
 0x288   :  { %v1803_v22 = vcombine.high %v2152_v15, %v2152_v15  ;;  %v1827_v51 = vcombine.low %v1802_v27, %v2152_v15  ;;  %v1744_v58 = vpop.f32.mrb[11].mxu1 }
 0x289   :  { %v1949_v52 = vsel %vm1844_vm5, %v1800_v16, -inf  ;;  %v1801_v59 = vcombine.high %v1744_v58, %v1744_v58 }
 0x28a   :  { %v1950_v20 = vmax.f32 %v1825_v23, %v1949_v52  ;;  %v1965_v41 = vsel %vm1844_vm5, %v1803_v22, -inf }
 0x28b   :  { %v1966_v60 = vmax.f32 %v1827_v51, %v1965_v41  ;;  %v1826_v32 = vcombine.low %v1744_v58, %v1801_v59 }
 0x28c   :  { %v1951_v62 = vrot.slane %v1950_v20, 4 }
 0x28d   :  { %v1967_v36 = vrot.slane %v1966_v60, 4  ;;  %v1958_v4 = vmax.f32 %v1826_v32, %v1957_v61  ;;  %v2139_v47 = vpop.f32.mrb[8].mxu0 }
 0x28e   :  { %v1952_v1 = vmax.f32 %v1950_v20, %v1951_v62  ;;  %v1790_v2 = vcombine.high %v2139_v47, %v2139_v47  ;;  %v1693_v33 = vpop.f32.mrb[9].mxu0  ;;  %v1893_v26 = vsel %vm1844_vm5, %v2139_v47, -inf }
 0x28f   :  { %v1968_v48 = vmax.f32 %v1966_v60, %v1967_v36  ;;  %v1959_v3 = vrot.slane %v1958_v4, 4  ;;  %v1788_v7 = vcombine.high %v1693_v33, %v1693_v33  ;;  %v1817_v0 = vcombine.low %v1787_v57, %v1693_v33  ;;  %v2140_v9 = vpop.f32.mrb[10].mxu0 }
 0x290   :  { %v1953_v10 = vrot.slane %v1952_v1, 2  ;;  %v1791_v12 = vcombine.high %v2140_v9, %v2140_v9  ;;  %v1819_v14 = vcombine.low %v1790_v2, %v2140_v9  ;;  %v1696_v5 = vpop.f32.mrb[11].mxu0 }
 0x291   :  { %v1969_v19 = vrot.slane %v1968_v48, 2  ;;  %v1960_v46 = vmax.f32 %v1958_v4, %v1959_v3  ;;  %v1885_v13 = vsel %vm1844_vm5, %v1788_v7, -inf  ;;  %v1789_v43 = vcombine.high %v1696_v5, %v1696_v5 }
 0x292   :  { %v1954_v21 = vmax.f32 %v1952_v1, %v1953_v10  ;;  %v1886_v24 = vmax.f32 %v1817_v0, %v1885_v13  ;;  %v1901_v25 = vsel %vm1844_vm5, %v1791_v12, -inf }
 0x293   :  { %v1970_v35 = vmax.f32 %v1968_v48, %v1969_v19  ;;  %v1961_v63 = vrot.slane %v1960_v46, 2  ;;  %v1902_v56 = vmax.f32 %v1819_v14, %v1901_v25  ;;  %v1818_v11 = vcombine.low %v1696_v5, %v1789_v43 }
 0x294   :  { %v1955_v30 = vrot.slane %v1954_v21, 1  ;;  %v1887_v18 = vrot.slane %v1886_v24, 4 }
 0x295   :  { %v1971_v29 = vrot.slane %v1970_v35, 1  ;;  %v1962_v28 = vmax.f32 %v1960_v46, %v1961_v63  ;;  %v1903_v54 = vrot.slane %v1902_v56, 4  ;;  %v1894_v53 = vmax.f32 %v1818_v11, %v1893_v26 }
 0x296   :  { %v1956_v17 = vmax.f32 %v1954_v21, %v1955_v30  ;;  %v1888_v8 = vmax.f32 %v1886_v24, %v1887_v18 }
 0x297   :  { %v1972_v38 = vmax.f32 %v1970_v35, %v1971_v29  ;;  %v1963_v39 = vrot.slane %v1962_v28, 1  ;;  %v1904_v31 = vmax.f32 %v1902_v56, %v1903_v54  ;;  %v1895_v40 = vrot.slane %v1894_v53, 4 }
 0x298   :  { %v1992_v55 = vadd.f32 %v2810_v37, %v1956_v17  ;;  %v1889_v44 = vrot.slane %v1888_v8, 2 }
 0x299   :  { %v1994_v42 = vadd.f32 %v2810_v37, %v1972_v38  ;;  %v1964_v27 = vmax.f32 %v1962_v28, %v1963_v39  ;;  %v1905_v49 = vrot.slane %v1904_v31, 2  ;;  %v1896_v6 = vmax.f32 %v1894_v53, %v1895_v40 }
 0x29a   :  { %v2008_v16 = vmax.f32 %v1992_v55, 0.0  ;;  %v1890_v23 = vmax.f32 %v1888_v8, %v1889_v44 }
 0x29b   :  { %v1993_v15 = vadd.f32 %v2810_v37, %v1964_v27  ;;  %v1906_v50 = vmax.f32 %v1904_v31, %v1905_v49  ;;  %v1897_v22 = vrot.slane %v1896_v6, 2  ;;  %v2010_v58 = vmax.f32 %v1994_v42, 0.0 }
 0x29c   :  { %v2056_v51 = vrot.slane %v2008_v16, 3  ;;  %v1891_v52 = vrot.slane %v1890_v23, 1 }
 0x29d   :  { %v2009_v59 = vmax.f32 %v1993_v15, 0.0  ;;  %v1907_v20 = vrot.slane %v1906_v50, 1  ;;  %v1898_v41 = vmax.f32 %v1896_v6, %v1897_v22  ;;  %v2060_v36 = vrot.slane %v2010_v58, 1 }
 0x29e   :  { %v1892_v60 = vmax.f32 %v1890_v23, %v1891_v52  ;;  %v2057_v32 = vsel %vm2040_vm10, %v2056_v51, %v2844_v34 }
 0x29f   :  { %v2058_v61 = vrot.slane %v2009_v59, 2  ;;  %v1908_v62 = vmax.f32 %v1906_v50, %v1907_v20  ;;  %v1899_v57 = vrot.slane %v1898_v41, 1 }
 0x2a0   :  { %v1984_v4 = vadd.f32 %v2810_v37, %v1892_v60 }
 0x2a1   :  { %v1986_v47 = vadd.f32 %v2810_v37, %v1908_v62  ;;  %v1900_v1 = vmax.f32 %v1898_v41, %v1899_v57  ;;  %v2059_v2 = vsel %vm2043_vm11, %v2058_v61, %v2057_v32 }
 0x2a2   :  { %v2000_v33 = vmax.f32 %v1984_v4, 0.0  ;;  %v2061_v48 = vsel %vm2046_vm12, %v2060_v36, %v2059_v2 }
 0x2a3   :  { %v1985_v3 = vadd.f32 %v2810_v37, %v1900_v1  ;;  %2065 = vst [vmem:[#allocation7 + $0x8] sm:$0xff] %v2061_v48  ;;  %v2002_v34 = vmax.f32 %v1986_v47, 0.0 }
 0x2a4   :  { %v2039_v7 = vrot.slane %v2000_v33, 3 }
 0x2a5   :  { %v2001_v0 = vmax.f32 %v1985_v3, 0.0  ;;  %v2045_v12 = vrot.slane %v2002_v34, 1 }
 0x2a6   :  { %v2041_v9 = vsel %vm2040_vm10, %v2039_v7, %v2854_v45 }
 0x2a7   :  { %v2042_v10 = vrot.slane %v2001_v0, 2 }
 0x2a9   :  { %v2044_v14 = vsel %vm2043_vm11, %v2042_v10, %v2041_v9 }
 0x2aa   :  { %v2047_v5 = vsel %vm2046_vm12, %v2045_v12, %v2044_v14 }
 0x2ab   :  { %2064 = vst [vmem:[#allocation7] sm:$0xff] %v2047_v5 }
 0x2ac   :  { %2339 = shalt.err (!%p2336_p6)
}
 0x2ad   :  { %s2340_s19 = scalar_lea.hbm %s2893_s3, 256 }
 0x2ae   :  { %p2341_p7 = scmp.ne.s32.totalorder %s2893_s3, %s2340_s19  ;;  %p2344_p8 = scmp.lt.u32.totalorder %s2340_s19, %s2893_s3 }
 0x2b0   :  { %p2346_p9 = pnand %p2344_p8, %p2341_p7 }
 0x2b2   :  { %2349 = shalt.err (!%p2346_p9)
}
 0x2b3   :  { %s2365_s24 = smov 128  }
 0x2b4   :  { %2077 = dma.vmem_to_hbm [thread:$0]  %s2072_s15, 256, %s2893_s3, [#allocation4], %s2365_s24, %s2365_s24, %s2360_s1  }
 0x2b5   :  { %2354 = dma.done.wait [#allocation4], 256  }
 0x2b6   :  { %2355 = vsyncadd [#allocation4], 4294967040 }
 0x2b7   :  { %2081 = vsyncpa [#allocation3], 1 }
 0x2b8   :  { %2082 = vsyncpa [#allocation6], 1 }
 0x2b9   :  { %2083 = vsyncpa [#allocation4], 1 }

</bundles_post_ra>
